<compile_context>
chip_gen: v6e
topology: v6e:2x2x1
jax: 0.10.0
libtpu: 0.0.40
codegen_flags: <defaults>
</compile_context>

<pallas_src>
import math

import jax
import jax.numpy as jnp
from jax.experimental import pallas as pl
from jax.experimental.pallas import tpu as pltpu

# ---------------- small synthetic RoBERTa config ----------------
VOCAB = 100
MAX_POS = 40
PAD = 1                      # RoBERTa pad_token_id == position padding_idx
HIDDEN = 32
N_HEADS = 4
HEAD_DIM = HIDDEN // N_HEADS
INTERMEDIATE = 64
N_LAYERS = 2
NUM_LABELS = 3
LN_EPS = 1e-5
SMART_WEIGHT = 0.02          # self.weight in the module
SMART_NOISE_VAR = 1e-5       # SMARTLoss default noise_var


# ---------------- fused encoder kernel (one grid step = one sequence) ----------------
def _encoder_kernel(emb_ref, noise_ref, bias_ref, pos_ref, type_ref,
                    eln_g_ref, eln_b_ref,
                    wqkv_ref, bqkv_ref, wo_ref, bo_ref,
                    ln1g_ref, ln1b_ref, w1_ref, b1_ref, w2_ref, b2_ref,
                    ln2g_ref, ln2b_ref, cls_ref):
    f32, bf16 = jnp.float32, jnp.bfloat16

    def layernorm(x, g, b):
        mu = jnp.mean(x, axis=-1, keepdims=True)
        xc = x - mu
        var = jnp.mean(xc * xc, axis=-1, keepdims=True)   # biased (torch.LayerNorm)
        return xc * jax.lax.rsqrt(var + LN_EPS) * g + b

    def dense(x, w, b):
        # bf16 operands to the MXU, f32 accumulation; elementwise stays f32.
        return jnp.dot(x.astype(bf16), w.astype(bf16),
                       preferred_element_type=f32) + b

    # roberta.embeddings(input_ids): LayerNorm of the gathered word+pos+type sum.
    e = layernorm(emb_ref[...], eln_g_ref[...], eln_b_ref[...])
    # SMART perturbation (zeros for the clean half of the stacked batch).
    e = e + noise_ref[...]
    # roberta.embeddings(inputs_embeds=e): add arange-position + type emb, LN again.
    h = layernorm(e + pos_ref[...] + type_ref[...], eln_g_ref[...], eln_b_ref[...])

    bias = bias_ref[...]                       # (1, S): 0 valid, finfo.min for pad
    scale = jnp.float32(1.0 / math.sqrt(HEAD_DIM))

    for l in range(N_LAYERS):
        # fused QKV projection: one (S, H) x (H, 3H) matmul.
        qkv = dense(h, wqkv_ref[l], bqkv_ref[l])           # (S, 3H) f32
        ctx_heads = []
        for hd in range(N_HEADS):                          # head split/merge in VMEM
            lo = hd * HEAD_DIM
            qs = qkv[:, lo:lo + HEAD_DIM]
            ks = qkv[:, HIDDEN + lo:HIDDEN + lo + HEAD_DIM]
            vs = qkv[:, 2 * HIDDEN + lo:2 * HIDDEN + lo + HEAD_DIM]
            sc = jax.lax.dot_general(                      # q @ k^T, no explicit transpose
                qs.astype(bf16), ks.astype(bf16),
                (((1,), (1,)), ((), ())),
                preferred_element_type=f32) * scale
            sc = sc + bias                                  # broadcast over query rows
            m = jnp.max(sc, axis=-1, keepdims=True)
            p = jnp.exp(sc - m)
            p = p * pl.reciprocal(jnp.sum(p, axis=-1, keepdims=True), approx=True)
            ctx_heads.append(jnp.dot(p.astype(bf16), vs.astype(bf16),
                                     preferred_element_type=f32))
        ctx = jnp.concatenate(ctx_heads, axis=-1)           # (S, H), merge heads

        attn = dense(ctx, wo_ref[l], bo_ref[l])
        h = layernorm(attn + h, ln1g_ref[l], ln1b_ref[l])   # post-LN
        ff = dense(h, w1_ref[l], b1_ref[l])
        # TODO(synk): HF RoBERTa uses erf-based GELU; tanh approximation (~1e-3 close).
        c = jnp.float32(math.sqrt(2.0 / math.pi))
        ff = 0.5 * ff * (1.0 + jnp.tanh(c * (ff + 0.044715 * ff * ff * ff)))
        ff = dense(ff, w2_ref[l], b2_ref[l])
        h = layernorm(ff + h, ln2g_ref[l], ln2b_ref[l])

    cls_ref[...] = h[0:1, :]       # only the <s> token is consumed by the classifier


def fused_encoder_cls(params, emb_stacked, noise_stacked, mask_bias_stacked, pos_eval):
    BS, S, H = emb_stacked.shape
    L, I = N_LAYERS, INTERMEDIATE

    seq_spec = pl.BlockSpec((None, S, H), lambda b: (b, 0, 0))
    bias_spec = pl.BlockSpec((None, 1, S), lambda b: (b, 0, 0))

    def rep(shape):                 # broadcast (weight) block: same tile every grid step
        n = len(shape)
        return pl.BlockSpec(shape, lambda b, n=n: (0,) * n)

    out = pl.pallas_call(
        _encoder_kernel,
        out_shape=jax.ShapeDtypeStruct((BS, 1, H), jnp.float32),
        grid=(BS,),
        in_specs=[seq_spec, seq_spec, bias_spec,
                  rep((S, H)), rep((1, H)), rep((1, H)), rep((1, H)),
                  rep((L, H, 3 * H)), rep((L, 1, 3 * H)),
                  rep((L, H, H)), rep((L, 1, H)),
                  rep((L, 1, H)), rep((L, 1, H)),
                  rep((L, H, I)), rep((L, 1, I)),
                  rep((L, I, H)), rep((L, 1, H)),
                  rep((L, 1, H)), rep((L, 1, H))],
        out_specs=pl.BlockSpec((None, 1, H), lambda b: (b, 0, 0)),
        compiler_params=pltpu.CompilerParams(
            dimension_semantics=("parallel",)),   # v7x: sequences split across the 2 TCs
    )(emb_stacked, noise_stacked, mask_bias_stacked, pos_eval,
      params["type_emb"], params["emb_ln_g"], params["emb_ln_b"],
      params["wqkv"], params["bqkv"], params["wo"], params["bo"],
      params["ln1_g"], params["ln1_b"], params["w1"], params["b1"],
      params["w2"], params["b2"], params["ln2_g"], params["ln2_b"])
    return out.reshape(BS, H)


# ---------------- parameters (deterministic synthetic init) ----------------
def init_params(key):
    def normal(k, shape):
        return 0.02 * jax.random.normal(k, shape, dtype=jnp.float32)

    keys = jax.random.split(key, 6)
    word_emb = normal(keys[0], (VOCAB, HIDDEN)).at[PAD].set(0.0)   # HF padding_idx row = 0
    pos_emb = normal(keys[1], (MAX_POS, HIDDEN)).at[PAD].set(0.0)
    params = {
        "word_emb": word_emb,
        "pos_emb": pos_emb,
        "type_emb": normal(keys[2], (1, HIDDEN)),
        "emb_ln_g": jnp.ones((1, HIDDEN), jnp.float32),
        "emb_ln_b": jnp.zeros((1, HIDDEN), jnp.float32),
        "cls_w": normal(keys[3], (HIDDEN, HIDDEN)),
        "cls_b": jnp.zeros((HIDDEN,), jnp.float32),
        "out_w": normal(keys[4], (HIDDEN, NUM_LABELS)),
        "out_b": jnp.zeros((NUM_LABELS,), jnp.float32),
    }
    layer_keys = jax.random.split(keys[5], N_LAYERS)
    wqkv, wo, w1, w2 = [], [], [], []
    for l in range(N_LAYERS):
        k4 = jax.random.split(layer_keys[l], 4)
        wqkv.append(normal(k4[0], (HIDDEN, 3 * HIDDEN)))   # merged q|k|v projection
        wo.append(normal(k4[1], (HIDDEN, HIDDEN)))
        w1.append(normal(k4[2], (HIDDEN, INTERMEDIATE)))
        w2.append(normal(k4[3], (INTERMEDIATE, HIDDEN)))
    L = N_LAYERS
    params.update({
        "wqkv": jnp.stack(wqkv), "bqkv": jnp.zeros((L, 1, 3 * HIDDEN), jnp.float32),
        "wo": jnp.stack(wo), "bo": jnp.zeros((L, 1, HIDDEN), jnp.float32),
        "ln1_g": jnp.ones((L, 1, HIDDEN), jnp.float32),
        "ln1_b": jnp.zeros((L, 1, HIDDEN), jnp.float32),
        "w1": jnp.stack(w1), "b1": jnp.zeros((L, 1, INTERMEDIATE), jnp.float32),
        "w2": jnp.stack(w2), "b2": jnp.zeros((L, 1, HIDDEN), jnp.float32),
        "ln2_g": jnp.ones((L, 1, HIDDEN), jnp.float32),
        "ln2_b": jnp.zeros((L, 1, HIDDEN), jnp.float32),
    })
    return params


# ---------------- losses (tiny (B,3) tensors -> plain JAX glue) ----------------
def _cross_entropy(logits, labels):
    logp = jax.nn.log_softmax(logits, axis=-1)
    nll = -jnp.take_along_axis(logp, labels[:, None], axis=-1)[:, 0]
    return jnp.mean(nll)                                  # F.cross_entropy default mean


def _kl_div_sum(log_input, target):
    # torch.nn.functional.kl_div(log_input, target, reduction='sum')
    return jnp.sum(target * (jnp.log(target) - log_input))


def _sym_kl_loss(inp, tgt):
    return (_kl_div_sum(jax.nn.log_softmax(inp, -1), jax.nn.softmax(tgt, -1))
            + _kl_div_sum(jax.nn.log_softmax(tgt, -1), jax.nn.softmax(inp, -1)))


# ---------------- forward ----------------
def smart_roberta_forward(params, input_ids, attention_mask, labels, noise):
    B, S = input_ids.shape

    # Embedding gathers (token-id lookups) stay in XLA.
    mask_i = (input_ids != PAD).astype(jnp.int32)
    pos_ids = jnp.cumsum(mask_i, axis=1) * mask_i + PAD            # RoBERTa position ids
    emb_sum = (params["word_emb"][input_ids]
               + params["pos_emb"][pos_ids]
               + params["type_emb"][0][None, None, :])             # (B, S, H) pre-LN sum

    # Stack clean + perturbed evals along the batch -> one fused kernel launch.
    emb_stacked = jnp.concatenate([emb_sum, emb_sum], axis=0)                      # (2B,S,H)
    noise_stacked = jnp.concatenate(
        [jnp.zeros_like(noise), noise * SMART_NOISE_VAR], axis=0)                  # (2B,S,H)
    mask_bias = ((1.0 - attention_mask.astype(jnp.float32))
                 * jnp.finfo(jnp.float32).min)[:, None, :]                         # (B,1,S)
    mask_bias_stacked = jnp.concatenate([mask_bias, mask_bias], axis=0)            # (2B,1,S)
    # HF inputs_embeds path: position ids = arange(padding_idx+1, ...), mask ignored.
    pos_eval = params["pos_emb"][jnp.arange(PAD + 1, S + PAD + 1)]                 # (S,H)

    cls = fused_encoder_cls(params, emb_stacked, noise_stacked,
                            mask_bias_stacked, pos_eval)                           # (2B,H)

    # RobertaClassificationHead (dense+tanh, out_proj). N=3 is lane-sparse -> plain XLA.
    x = jnp.tanh(cls @ params["cls_w"] + params["cls_b"])
    logits_all = x @ params["out_w"] + params["out_b"]                             # (2B,3)
    logits, logits_pert = logits_all[:B], logits_all[B:]

    loss = _cross_entropy(logits.reshape(-1, NUM_LABELS), labels.reshape(-1))
    # SMARTLoss defaults: num_steps=1 -> single perturbed eval + symmetric KL.
    loss = loss + SMART_WEIGHT * _sym_kl_loss(logits_pert, logits)
    return logits, loss


if __name__ == "__main__":
    B, S = 2, 8
    key = jax.random.PRNGKey(0)
    k_param, k_ids, k_lbl, k_noise = jax.random.split(key, 4)

    params = init_params(k_param)
    input_ids = jax.random.randint(k_ids, (B, S), 2, VOCAB, dtype=jnp.int32)
    input_ids = input_ids.at[1, -2:].set(PAD)                      # pad tail of sequence 1
    attention_mask = (input_ids != PAD).astype(jnp.int32)
    labels = jax.random.randint(k_lbl, (B,), 0, NUM_LABELS, dtype=jnp.int32)
    noise = jax.random.normal(k_noise, (B, S, HIDDEN), dtype=jnp.float32)

    fwd = jax.jit(smart_roberta_forward)
    logits, loss = fwd(params, input_ids, attention_mask, labels, noise)
    jax.block_until_ready((logits, loss))

    assert logits.shape == (B, NUM_LABELS)
    assert bool(jnp.isfinite(loss))
    print("KERNEL_OK")
</pallas_src>

<mosaic_0001>
module attributes {stable_mosaic.version = 11 : i64} {
  func.func @_encoder_kernel(%arg0: i32, %arg1: memref<1x8x32xf32, #tpu.memory_space<vmem>>, %arg2: memref<1x8x32xf32, #tpu.memory_space<vmem>>, %arg3: memref<1x1x8xf32, #tpu.memory_space<vmem>>, %arg4: memref<8x32xf32, #tpu.memory_space<vmem>>, %arg5: memref<1x32xf32, #tpu.memory_space<vmem>>, %arg6: memref<1x32xf32, #tpu.memory_space<vmem>>, %arg7: memref<1x32xf32, #tpu.memory_space<vmem>>, %arg8: memref<2x32x96xf32, #tpu.memory_space<vmem>>, %arg9: memref<2x1x96xf32, #tpu.memory_space<vmem>>, %arg10: memref<2x32x32xf32, #tpu.memory_space<vmem>>, %arg11: memref<2x1x32xf32, #tpu.memory_space<vmem>>, %arg12: memref<2x1x32xf32, #tpu.memory_space<vmem>>, %arg13: memref<2x1x32xf32, #tpu.memory_space<vmem>>, %arg14: memref<2x32x64xf32, #tpu.memory_space<vmem>>, %arg15: memref<2x1x64xf32, #tpu.memory_space<vmem>>, %arg16: memref<2x64x32xf32, #tpu.memory_space<vmem>>, %arg17: memref<2x1x32xf32, #tpu.memory_space<vmem>>, %arg18: memref<2x1x32xf32, #tpu.memory_space<vmem>>, %arg19: memref<2x1x32xf32, #tpu.memory_space<vmem>>, %arg20: memref<1x1x32xf32, #tpu.memory_space<vmem>>) attributes {dimension_semantics = [#tpu.dimension_semantics<parallel>], iteration_bounds = array<i64: 4>, scalar_prefetch = 0 : i64, scratch_operands = 0 : i64, tpu.core_type = #tpu.core_type<tc>, window_params = [{transform_indices = @transform_0, window_bounds = array<i64: 1, 8, 32>}, {transform_indices = @transform_1, window_bounds = array<i64: 1, 8, 32>}, {transform_indices = @transform_2, window_bounds = array<i64: 1, 1, 8>}, {pipeline_mode = #tpu.pipeline_mode<synchronous>, transform_indices = @transform_3, window_bounds = array<i64: 8, 32>}, {pipeline_mode = #tpu.pipeline_mode<synchronous>, transform_indices = @transform_4, window_bounds = array<i64: 1, 32>}, {pipeline_mode = #tpu.pipeline_mode<synchronous>, transform_indices = @transform_5, window_bounds = array<i64: 1, 32>}, {pipeline_mode = #tpu.pipeline_mode<synchronous>, transform_indices = @transform_6, window_bounds = array<i64: 1, 32>}, {pipeline_mode = #tpu.pipeline_mode<synchronous>, transform_indices = @transform_7, window_bounds = array<i64: 2, 32, 96>}, {pipeline_mode = #tpu.pipeline_mode<synchronous>, transform_indices = @transform_8, window_bounds = array<i64: 2, 1, 96>}, {pipeline_mode = #tpu.pipeline_mode<synchronous>, transform_indices = @transform_9, window_bounds = array<i64: 2, 32, 32>}, {pipeline_mode = #tpu.pipeline_mode<synchronous>, transform_indices = @transform_10, window_bounds = array<i64: 2, 1, 32>}, {pipeline_mode = #tpu.pipeline_mode<synchronous>, transform_indices = @transform_11, window_bounds = array<i64: 2, 1, 32>}, {pipeline_mode = #tpu.pipeline_mode<synchronous>, transform_indices = @transform_12, window_bounds = array<i64: 2, 1, 32>}, {pipeline_mode = #tpu.pipeline_mode<synchronous>, transform_indices = @transform_13, window_bounds = array<i64: 2, 32, 64>}, {pipeline_mode = #tpu.pipeline_mode<synchronous>, transform_indices = @transform_14, window_bounds = array<i64: 2, 1, 64>}, {pipeline_mode = #tpu.pipeline_mode<synchronous>, transform_indices = @transform_15, window_bounds = array<i64: 2, 64, 32>}, {pipeline_mode = #tpu.pipeline_mode<synchronous>, transform_indices = @transform_16, window_bounds = array<i64: 2, 1, 32>}, {pipeline_mode = #tpu.pipeline_mode<synchronous>, transform_indices = @transform_17, window_bounds = array<i64: 2, 1, 32>}, {pipeline_mode = #tpu.pipeline_mode<synchronous>, transform_indices = @transform_18, window_bounds = array<i64: 2, 1, 32>}, {transform_indices = @transform_19, window_bounds = array<i64: 1, 1, 32>}]} {
    %c0 = arith.constant 0 : index
    %c0_0 = arith.constant 0 : index
    %c0_1 = arith.constant 0 : index
    %0 = vector.load %arg1[%c0, %c0_0, %c0_1] : memref<1x8x32xf32, #tpu.memory_space<vmem>>, vector<1x8x32xf32>
    %1 = vector.shape_cast %0 : vector<1x8x32xf32> to vector<8x32xf32>
    %c0_2 = arith.constant 0 : index
    %c0_3 = arith.constant 0 : index
    %2 = vector.load %arg6[%c0_2, %c0_3] : memref<1x32xf32, #tpu.memory_space<vmem>>, vector<1x32xf32>
    %c0_4 = arith.constant 0 : index
    %c0_5 = arith.constant 0 : index
    %3 = vector.load %arg7[%c0_4, %c0_5] : memref<1x32xf32, #tpu.memory_space<vmem>>, vector<1x32xf32>
    %cst = arith.constant dense<0.000000e+00> : vector<8xf32>
    %4 = vector.multi_reduction <add>, %1, %cst [1] : vector<8x32xf32> to vector<8xf32>
    %5 = vector.shape_cast %4 : vector<8xf32> to vector<8x1xf32>
    %cst_6 = arith.constant 3.200000e+01 : f32
    %6 = vector.broadcast %cst_6 : f32 to vector<8x1xf32>
    %7 = arith.divf %5, %6 : vector<8x1xf32>
    %8 = vector.broadcast %7 : vector<8x1xf32> to vector<8x32xf32>
    %9 = arith.subf %1, %8 : vector<8x32xf32>
    %10 = arith.mulf %9, %9 : vector<8x32xf32>
    %cst_7 = arith.constant dense<0.000000e+00> : vector<8xf32>
    %11 = vector.multi_reduction <add>, %10, %cst_7 [1] : vector<8x32xf32> to vector<8xf32>
    %12 = vector.shape_cast %11 : vector<8xf32> to vector<8x1xf32>
    %cst_8 = arith.constant 3.200000e+01 : f32
    %13 = vector.broadcast %cst_8 : f32 to vector<8x1xf32>
    %14 = arith.divf %12, %13 : vector<8x1xf32>
    %cst_9 = arith.constant 9.99999974E-6 : f32
    %15 = vector.broadcast %cst_9 : f32 to vector<8x1xf32>
    %16 = arith.addf %14, %15 : vector<8x1xf32>
    %17 = math.rsqrt %16 : vector<8x1xf32>
    %18 = vector.broadcast %17 : vector<8x1xf32> to vector<8x32xf32>
    %19 = arith.mulf %9, %18 : vector<8x32xf32>
    %20 = vector.broadcast %2 : vector<1x32xf32> to vector<8x32xf32>
    %21 = arith.mulf %19, %20 : vector<8x32xf32>
    %22 = vector.broadcast %3 : vector<1x32xf32> to vector<8x32xf32>
    %23 = arith.addf %21, %22 : vector<8x32xf32>
    %c0_10 = arith.constant 0 : index
    %c0_11 = arith.constant 0 : index
    %c0_12 = arith.constant 0 : index
    %24 = vector.load %arg2[%c0_10, %c0_11, %c0_12] : memref<1x8x32xf32, #tpu.memory_space<vmem>>, vector<1x8x32xf32>
    %25 = vector.shape_cast %24 : vector<1x8x32xf32> to vector<8x32xf32>
    %26 = arith.addf %23, %25 : vector<8x32xf32>
    %c0_13 = arith.constant 0 : index
    %c0_14 = arith.constant 0 : index
    %27 = vector.load %arg4[%c0_13, %c0_14] : memref<8x32xf32, #tpu.memory_space<vmem>>, vector<8x32xf32>
    %28 = arith.addf %26, %27 : vector<8x32xf32>
    %c0_15 = arith.constant 0 : index
    %c0_16 = arith.constant 0 : index
    %29 = vector.load %arg5[%c0_15, %c0_16] : memref<1x32xf32, #tpu.memory_space<vmem>>, vector<1x32xf32>
    %30 = vector.broadcast %29 : vector<1x32xf32> to vector<8x32xf32>
    %31 = arith.addf %28, %30 : vector<8x32xf32>
    %c0_17 = arith.constant 0 : index
    %c0_18 = arith.constant 0 : index
    %32 = vector.load %arg6[%c0_17, %c0_18] : memref<1x32xf32, #tpu.memory_space<vmem>>, vector<1x32xf32>
    %c0_19 = arith.constant 0 : index
    %c0_20 = arith.constant 0 : index
    %33 = vector.load %arg7[%c0_19, %c0_20] : memref<1x32xf32, #tpu.memory_space<vmem>>, vector<1x32xf32>
    %cst_21 = arith.constant dense<0.000000e+00> : vector<8xf32>
    %34 = vector.multi_reduction <add>, %31, %cst_21 [1] : vector<8x32xf32> to vector<8xf32>
    %35 = vector.shape_cast %34 : vector<8xf32> to vector<8x1xf32>
    %cst_22 = arith.constant 3.200000e+01 : f32
    %36 = vector.broadcast %cst_22 : f32 to vector<8x1xf32>
    %37 = arith.divf %35, %36 : vector<8x1xf32>
    %38 = vector.broadcast %37 : vector<8x1xf32> to vector<8x32xf32>
    %39 = arith.subf %31, %38 : vector<8x32xf32>
    %40 = arith.mulf %39, %39 : vector<8x32xf32>
    %cst_23 = arith.constant dense<0.000000e+00> : vector<8xf32>
    %41 = vector.multi_reduction <add>, %40, %cst_23 [1] : vector<8x32xf32> to vector<8xf32>
    %42 = vector.shape_cast %41 : vector<8xf32> to vector<8x1xf32>
    %cst_24 = arith.constant 3.200000e+01 : f32
    %43 = vector.broadcast %cst_24 : f32 to vector<8x1xf32>
    %44 = arith.divf %42, %43 : vector<8x1xf32>
    %cst_25 = arith.constant 9.99999974E-6 : f32
    %45 = vector.broadcast %cst_25 : f32 to vector<8x1xf32>
    %46 = arith.addf %44, %45 : vector<8x1xf32>
    %47 = math.rsqrt %46 : vector<8x1xf32>
    %48 = vector.broadcast %47 : vector<8x1xf32> to vector<8x32xf32>
    %49 = arith.mulf %39, %48 : vector<8x32xf32>
    %50 = vector.broadcast %32 : vector<1x32xf32> to vector<8x32xf32>
    %51 = arith.mulf %49, %50 : vector<8x32xf32>
    %52 = vector.broadcast %33 : vector<1x32xf32> to vector<8x32xf32>
    %53 = arith.addf %51, %52 : vector<8x32xf32>
    %c0_26 = arith.constant 0 : index
    %c0_27 = arith.constant 0 : index
    %c0_28 = arith.constant 0 : index
    %54 = vector.load %arg3[%c0_26, %c0_27, %c0_28] : memref<1x1x8xf32, #tpu.memory_space<vmem>>, vector<1x1x8xf32>
    %55 = vector.shape_cast %54 : vector<1x1x8xf32> to vector<1x8xf32>
    %c0_29 = arith.constant 0 : index
    %c0_30 = arith.constant 0 : index
    %c0_31 = arith.constant 0 : index
    %56 = vector.load %arg8[%c0_29, %c0_30, %c0_31] : memref<2x32x96xf32, #tpu.memory_space<vmem>>, vector<1x32x96xf32>
    %57 = vector.shape_cast %56 : vector<1x32x96xf32> to vector<32x96xf32>
    %c0_32 = arith.constant 0 : index
    %c0_33 = arith.constant 0 : index
    %c0_34 = arith.constant 0 : index
    %58 = vector.load %arg9[%c0_32, %c0_33, %c0_34] : memref<2x1x96xf32, #tpu.memory_space<vmem>>, vector<1x1x96xf32>
    %59 = vector.shape_cast %58 : vector<1x1x96xf32> to vector<1x96xf32>
    %60 = arith.truncf %53 : vector<8x32xf32> to vector<8x32xbf16>
    %61 = arith.truncf %57 : vector<32x96xf32> to vector<32x96xbf16>
    %cst_35 = arith.constant dense<0.000000e+00> : vector<8x96xf32>
    %62 = tpu.matmul %60, %61, %cst_35 {dimension_numbers = #tpu.dot_dimension_numbers<[1], [0], [0], [1], [0, 0, 1, 1], [], []>} : vector<8x32xbf16>, vector<32x96xbf16>, vector<8x96xf32> -> vector<8x96xf32>
    %63 = vector.broadcast %59 : vector<1x96xf32> to vector<8x96xf32>
    %64 = arith.addf %62, %63 : vector<8x96xf32>
    %65 = vector.extract_strided_slice %64 {offsets = [0, 0], sizes = [8, 8], strides = [1, 1]} : vector<8x96xf32> to vector<8x8xf32>
    %66 = vector.extract_strided_slice %64 {offsets = [0, 32], sizes = [8, 8], strides = [1, 1]} : vector<8x96xf32> to vector<8x8xf32>
    %67 = vector.extract_strided_slice %64 {offsets = [0, 64], sizes = [8, 8], strides = [1, 1]} : vector<8x96xf32> to vector<8x8xf32>
    %68 = arith.truncf %65 : vector<8x8xf32> to vector<8x8xbf16>
    %69 = arith.truncf %66 : vector<8x8xf32> to vector<8x8xbf16>
    %cst_36 = arith.constant dense<0.000000e+00> : vector<8x8xf32>
    %70 = tpu.matmul %68, %69, %cst_36 {dimension_numbers = #tpu.dot_dimension_numbers<[1], [1], [0], [0], [0, 0, 1, 0], [], []>} : vector<8x8xbf16>, vector<8x8xbf16>, vector<8x8xf32> -> vector<8x8xf32>
    %cst_37 = arith.constant 0.353553385 : f32
    %71 = vector.broadcast %cst_37 : f32 to vector<8x8xf32>
    %72 = arith.mulf %70, %71 : vector<8x8xf32>
    %73 = vector.broadcast %55 : vector<1x8xf32> to vector<8x8xf32>
    %74 = arith.addf %72, %73 : vector<8x8xf32>
    %cst_38 = arith.constant dense<0xFF800000> : vector<8xf32>
    %75 = vector.multi_reduction <maximumf>, %74, %cst_38 [1] : vector<8x8xf32> to vector<8xf32>
    %76 = vector.shape_cast %75 : vector<8xf32> to vector<8x1xf32>
    %77 = vector.broadcast %76 : vector<8x1xf32> to vector<8x8xf32>
    %78 = arith.subf %74, %77 : vector<8x8xf32>
    %79 = math.exp %78 : vector<8x8xf32>
    %cst_39 = arith.constant dense<0.000000e+00> : vector<8xf32>
    %80 = vector.multi_reduction <add>, %79, %cst_39 [1] : vector<8x8xf32> to vector<8xf32>
    %81 = vector.shape_cast %80 : vector<8xf32> to vector<8x1xf32>
    %82 = tpu.reciprocal %81 {approx = true} : vector<8x1xf32> -> vector<8x1xf32>
    %83 = vector.broadcast %82 : vector<8x1xf32> to vector<8x8xf32>
    %84 = arith.mulf %79, %83 : vector<8x8xf32>
    %85 = arith.truncf %84 : vector<8x8xf32> to vector<8x8xbf16>
    %86 = arith.truncf %67 : vector<8x8xf32> to vector<8x8xbf16>
    %cst_40 = arith.constant dense<0.000000e+00> : vector<8x8xf32>
    %87 = tpu.matmul %85, %86, %cst_40 {dimension_numbers = #tpu.dot_dimension_numbers<[1], [0], [0], [1], [0, 0, 1, 1], [], []>} : vector<8x8xbf16>, vector<8x8xbf16>, vector<8x8xf32> -> vector<8x8xf32>
    %88 = vector.extract_strided_slice %64 {offsets = [0, 8], sizes = [8, 8], strides = [1, 1]} : vector<8x96xf32> to vector<8x8xf32>
    %89 = vector.extract_strided_slice %64 {offsets = [0, 40], sizes = [8, 8], strides = [1, 1]} : vector<8x96xf32> to vector<8x8xf32>
    %90 = vector.extract_strided_slice %64 {offsets = [0, 72], sizes = [8, 8], strides = [1, 1]} : vector<8x96xf32> to vector<8x8xf32>
    %91 = arith.truncf %88 : vector<8x8xf32> to vector<8x8xbf16>
    %92 = arith.truncf %89 : vector<8x8xf32> to vector<8x8xbf16>
    %cst_41 = arith.constant dense<0.000000e+00> : vector<8x8xf32>
    %93 = tpu.matmul %91, %92, %cst_41 {dimension_numbers = #tpu.dot_dimension_numbers<[1], [1], [0], [0], [0, 0, 1, 0], [], []>} : vector<8x8xbf16>, vector<8x8xbf16>, vector<8x8xf32> -> vector<8x8xf32>
    %cst_42 = arith.constant 0.353553385 : f32
    %94 = vector.broadcast %cst_42 : f32 to vector<8x8xf32>
    %95 = arith.mulf %93, %94 : vector<8x8xf32>
    %96 = vector.broadcast %55 : vector<1x8xf32> to vector<8x8xf32>
    %97 = arith.addf %95, %96 : vector<8x8xf32>
    %cst_43 = arith.constant dense<0xFF800000> : vector<8xf32>
    %98 = vector.multi_reduction <maximumf>, %97, %cst_43 [1] : vector<8x8xf32> to vector<8xf32>
    %99 = vector.shape_cast %98 : vector<8xf32> to vector<8x1xf32>
    %100 = vector.broadcast %99 : vector<8x1xf32> to vector<8x8xf32>
    %101 = arith.subf %97, %100 : vector<8x8xf32>
    %102 = math.exp %101 : vector<8x8xf32>
    %cst_44 = arith.constant dense<0.000000e+00> : vector<8xf32>
    %103 = vector.multi_reduction <add>, %102, %cst_44 [1] : vector<8x8xf32> to vector<8xf32>
    %104 = vector.shape_cast %103 : vector<8xf32> to vector<8x1xf32>
    %105 = tpu.reciprocal %104 {approx = true} : vector<8x1xf32> -> vector<8x1xf32>
    %106 = vector.broadcast %105 : vector<8x1xf32> to vector<8x8xf32>
    %107 = arith.mulf %102, %106 : vector<8x8xf32>
    %108 = arith.truncf %107 : vector<8x8xf32> to vector<8x8xbf16>
    %109 = arith.truncf %90 : vector<8x8xf32> to vector<8x8xbf16>
    %cst_45 = arith.constant dense<0.000000e+00> : vector<8x8xf32>
    %110 = tpu.matmul %108, %109, %cst_45 {dimension_numbers = #tpu.dot_dimension_numbers<[1], [0], [0], [1], [0, 0, 1, 1], [], []>} : vector<8x8xbf16>, vector<8x8xbf16>, vector<8x8xf32> -> vector<8x8xf32>
    %111 = vector.extract_strided_slice %64 {offsets = [0, 16], sizes = [8, 8], strides = [1, 1]} : vector<8x96xf32> to vector<8x8xf32>
    %112 = vector.extract_strided_slice %64 {offsets = [0, 48], sizes = [8, 8], strides = [1, 1]} : vector<8x96xf32> to vector<8x8xf32>
    %113 = vector.extract_strided_slice %64 {offsets = [0, 80], sizes = [8, 8], strides = [1, 1]} : vector<8x96xf32> to vector<8x8xf32>
    %114 = arith.truncf %111 : vector<8x8xf32> to vector<8x8xbf16>
    %115 = arith.truncf %112 : vector<8x8xf32> to vector<8x8xbf16>
    %cst_46 = arith.constant dense<0.000000e+00> : vector<8x8xf32>
    %116 = tpu.matmul %114, %115, %cst_46 {dimension_numbers = #tpu.dot_dimension_numbers<[1], [1], [0], [0], [0, 0, 1, 0], [], []>} : vector<8x8xbf16>, vector<8x8xbf16>, vector<8x8xf32> -> vector<8x8xf32>
    %cst_47 = arith.constant 0.353553385 : f32
    %117 = vector.broadcast %cst_47 : f32 to vector<8x8xf32>
    %118 = arith.mulf %116, %117 : vector<8x8xf32>
    %119 = vector.broadcast %55 : vector<1x8xf32> to vector<8x8xf32>
    %120 = arith.addf %118, %119 : vector<8x8xf32>
    %cst_48 = arith.constant dense<0xFF800000> : vector<8xf32>
    %121 = vector.multi_reduction <maximumf>, %120, %cst_48 [1] : vector<8x8xf32> to vector<8xf32>
    %122 = vector.shape_cast %121 : vector<8xf32> to vector<8x1xf32>
    %123 = vector.broadcast %122 : vector<8x1xf32> to vector<8x8xf32>
    %124 = arith.subf %120, %123 : vector<8x8xf32>
    %125 = math.exp %124 : vector<8x8xf32>
    %cst_49 = arith.constant dense<0.000000e+00> : vector<8xf32>
    %126 = vector.multi_reduction <add>, %125, %cst_49 [1] : vector<8x8xf32> to vector<8xf32>
    %127 = vector.shape_cast %126 : vector<8xf32> to vector<8x1xf32>
    %128 = tpu.reciprocal %127 {approx = true} : vector<8x1xf32> -> vector<8x1xf32>
    %129 = vector.broadcast %128 : vector<8x1xf32> to vector<8x8xf32>
    %130 = arith.mulf %125, %129 : vector<8x8xf32>
    %131 = arith.truncf %130 : vector<8x8xf32> to vector<8x8xbf16>
    %132 = arith.truncf %113 : vector<8x8xf32> to vector<8x8xbf16>
    %cst_50 = arith.constant dense<0.000000e+00> : vector<8x8xf32>
    %133 = tpu.matmul %131, %132, %cst_50 {dimension_numbers = #tpu.dot_dimension_numbers<[1], [0], [0], [1], [0, 0, 1, 1], [], []>} : vector<8x8xbf16>, vector<8x8xbf16>, vector<8x8xf32> -> vector<8x8xf32>
    %134 = vector.extract_strided_slice %64 {offsets = [0, 24], sizes = [8, 8], strides = [1, 1]} : vector<8x96xf32> to vector<8x8xf32>
    %135 = vector.extract_strided_slice %64 {offsets = [0, 56], sizes = [8, 8], strides = [1, 1]} : vector<8x96xf32> to vector<8x8xf32>
    %136 = vector.extract_strided_slice %64 {offsets = [0, 88], sizes = [8, 8], strides = [1, 1]} : vector<8x96xf32> to vector<8x8xf32>
    %137 = arith.truncf %134 : vector<8x8xf32> to vector<8x8xbf16>
    %138 = arith.truncf %135 : vector<8x8xf32> to vector<8x8xbf16>
    %cst_51 = arith.constant dense<0.000000e+00> : vector<8x8xf32>
    %139 = tpu.matmul %137, %138, %cst_51 {dimension_numbers = #tpu.dot_dimension_numbers<[1], [1], [0], [0], [0, 0, 1, 0], [], []>} : vector<8x8xbf16>, vector<8x8xbf16>, vector<8x8xf32> -> vector<8x8xf32>
    %cst_52 = arith.constant 0.353553385 : f32
    %140 = vector.broadcast %cst_52 : f32 to vector<8x8xf32>
    %141 = arith.mulf %139, %140 : vector<8x8xf32>
    %142 = vector.broadcast %55 : vector<1x8xf32> to vector<8x8xf32>
    %143 = arith.addf %141, %142 : vector<8x8xf32>
    %cst_53 = arith.constant dense<0xFF800000> : vector<8xf32>
    %144 = vector.multi_reduction <maximumf>, %143, %cst_53 [1] : vector<8x8xf32> to vector<8xf32>
    %145 = vector.shape_cast %144 : vector<8xf32> to vector<8x1xf32>
    %146 = vector.broadcast %145 : vector<8x1xf32> to vector<8x8xf32>
    %147 = arith.subf %143, %146 : vector<8x8xf32>
    %148 = math.exp %147 : vector<8x8xf32>
    %cst_54 = arith.constant dense<0.000000e+00> : vector<8xf32>
    %149 = vector.multi_reduction <add>, %148, %cst_54 [1] : vector<8x8xf32> to vector<8xf32>
    %150 = vector.shape_cast %149 : vector<8xf32> to vector<8x1xf32>
    %151 = tpu.reciprocal %150 {approx = true} : vector<8x1xf32> -> vector<8x1xf32>
    %152 = vector.broadcast %151 : vector<8x1xf32> to vector<8x8xf32>
    %153 = arith.mulf %148, %152 : vector<8x8xf32>
    %154 = arith.truncf %153 : vector<8x8xf32> to vector<8x8xbf16>
    %155 = arith.truncf %136 : vector<8x8xf32> to vector<8x8xbf16>
    %cst_55 = arith.constant dense<0.000000e+00> : vector<8x8xf32>
    %156 = tpu.matmul %154, %155, %cst_55 {dimension_numbers = #tpu.dot_dimension_numbers<[1], [0], [0], [1], [0, 0, 1, 1], [], []>} : vector<8x8xbf16>, vector<8x8xbf16>, vector<8x8xf32> -> vector<8x8xf32>
    %157 = tpu.concatenate %87, %110, %133, %156 in 1 : vector<8x8xf32>, vector<8x8xf32>, vector<8x8xf32>, vector<8x8xf32> -> vector<8x32xf32>
    %c0_56 = arith.constant 0 : index
    %c0_57 = arith.constant 0 : index
    %c0_58 = arith.constant 0 : index
    %158 = vector.load %arg10[%c0_56, %c0_57, %c0_58] : memref<2x32x32xf32, #tpu.memory_space<vmem>>, vector<1x32x32xf32>
    %159 = vector.shape_cast %158 : vector<1x32x32xf32> to vector<32x32xf32>
    %c0_59 = arith.constant 0 : index
    %c0_60 = arith.constant 0 : index
    %c0_61 = arith.constant 0 : index
    %160 = vector.load %arg11[%c0_59, %c0_60, %c0_61] : memref<2x1x32xf32, #tpu.memory_space<vmem>>, vector<1x1x32xf32>
    %161 = vector.shape_cast %160 : vector<1x1x32xf32> to vector<1x32xf32>
    %162 = arith.truncf %157 : vector<8x32xf32> to vector<8x32xbf16>
    %163 = arith.truncf %159 : vector<32x32xf32> to vector<32x32xbf16>
    %cst_62 = arith.constant dense<0.000000e+00> : vector<8x32xf32>
    %164 = tpu.matmul %162, %163, %cst_62 {dimension_numbers = #tpu.dot_dimension_numbers<[1], [0], [0], [1], [0, 0, 1, 1], [], []>} : vector<8x32xbf16>, vector<32x32xbf16>, vector<8x32xf32> -> vector<8x32xf32>
    %165 = vector.broadcast %161 : vector<1x32xf32> to vector<8x32xf32>
    %166 = arith.addf %164, %165 : vector<8x32xf32>
    %167 = arith.addf %166, %53 : vector<8x32xf32>
    %c0_63 = arith.constant 0 : index
    %c0_64 = arith.constant 0 : index
    %c0_65 = arith.constant 0 : index
    %168 = vector.load %arg12[%c0_63, %c0_64, %c0_65] : memref<2x1x32xf32, #tpu.memory_space<vmem>>, vector<1x1x32xf32>
    %169 = vector.shape_cast %168 : vector<1x1x32xf32> to vector<1x32xf32>
    %c0_66 = arith.constant 0 : index
    %c0_67 = arith.constant 0 : index
    %c0_68 = arith.constant 0 : index
    %170 = vector.load %arg13[%c0_66, %c0_67, %c0_68] : memref<2x1x32xf32, #tpu.memory_space<vmem>>, vector<1x1x32xf32>
    %171 = vector.shape_cast %170 : vector<1x1x32xf32> to vector<1x32xf32>
    %cst_69 = arith.constant dense<0.000000e+00> : vector<8xf32>
    %172 = vector.multi_reduction <add>, %167, %cst_69 [1] : vector<8x32xf32> to vector<8xf32>
    %173 = vector.shape_cast %172 : vector<8xf32> to vector<8x1xf32>
    %cst_70 = arith.constant 3.200000e+01 : f32
    %174 = vector.broadcast %cst_70 : f32 to vector<8x1xf32>
    %175 = arith.divf %173, %174 : vector<8x1xf32>
    %176 = vector.broadcast %175 : vector<8x1xf32> to vector<8x32xf32>
    %177 = arith.subf %167, %176 : vector<8x32xf32>
    %178 = arith.mulf %177, %177 : vector<8x32xf32>
    %cst_71 = arith.constant dense<0.000000e+00> : vector<8xf32>
    %179 = vector.multi_reduction <add>, %178, %cst_71 [1] : vector<8x32xf32> to vector<8xf32>
    %180 = vector.shape_cast %179 : vector<8xf32> to vector<8x1xf32>
    %cst_72 = arith.constant 3.200000e+01 : f32
    %181 = vector.broadcast %cst_72 : f32 to vector<8x1xf32>
    %182 = arith.divf %180, %181 : vector<8x1xf32>
    %cst_73 = arith.constant 9.99999974E-6 : f32
    %183 = vector.broadcast %cst_73 : f32 to vector<8x1xf32>
    %184 = arith.addf %182, %183 : vector<8x1xf32>
    %185 = math.rsqrt %184 : vector<8x1xf32>
    %186 = vector.broadcast %185 : vector<8x1xf32> to vector<8x32xf32>
    %187 = arith.mulf %177, %186 : vector<8x32xf32>
    %188 = vector.broadcast %169 : vector<1x32xf32> to vector<8x32xf32>
    %189 = arith.mulf %187, %188 : vector<8x32xf32>
    %190 = vector.broadcast %171 : vector<1x32xf32> to vector<8x32xf32>
    %191 = arith.addf %189, %190 : vector<8x32xf32>
    %c0_74 = arith.constant 0 : index
    %c0_75 = arith.constant 0 : index
    %c0_76 = arith.constant 0 : index
    %192 = vector.load %arg14[%c0_74, %c0_75, %c0_76] : memref<2x32x64xf32, #tpu.memory_space<vmem>>, vector<1x32x64xf32>
    %193 = vector.shape_cast %192 : vector<1x32x64xf32> to vector<32x64xf32>
    %c0_77 = arith.constant 0 : index
    %c0_78 = arith.constant 0 : index
    %c0_79 = arith.constant 0 : index
    %194 = vector.load %arg15[%c0_77, %c0_78, %c0_79] : memref<2x1x64xf32, #tpu.memory_space<vmem>>, vector<1x1x64xf32>
    %195 = vector.shape_cast %194 : vector<1x1x64xf32> to vector<1x64xf32>
    %196 = arith.truncf %191 : vector<8x32xf32> to vector<8x32xbf16>
    %197 = arith.truncf %193 : vector<32x64xf32> to vector<32x64xbf16>
    %cst_80 = arith.constant dense<0.000000e+00> : vector<8x64xf32>
    %198 = tpu.matmul %196, %197, %cst_80 {dimension_numbers = #tpu.dot_dimension_numbers<[1], [0], [0], [1], [0, 0, 1, 1], [], []>} : vector<8x32xbf16>, vector<32x64xbf16>, vector<8x64xf32> -> vector<8x64xf32>
    %199 = vector.broadcast %195 : vector<1x64xf32> to vector<8x64xf32>
    %200 = arith.addf %198, %199 : vector<8x64xf32>
    %cst_81 = arith.constant 5.000000e-01 : f32
    %201 = vector.broadcast %cst_81 : f32 to vector<8x64xf32>
    %202 = arith.mulf %201, %200 : vector<8x64xf32>
    %cst_82 = arith.constant 4.471500e-02 : f32
    %203 = vector.broadcast %cst_82 : f32 to vector<8x64xf32>
    %204 = arith.mulf %203, %200 : vector<8x64xf32>
    %205 = arith.mulf %204, %200 : vector<8x64xf32>
    %206 = arith.mulf %205, %200 : vector<8x64xf32>
    %207 = arith.addf %200, %206 : vector<8x64xf32>
    %cst_83 = arith.constant 0.797884583 : f32
    %208 = vector.broadcast %cst_83 : f32 to vector<8x64xf32>
    %209 = arith.mulf %208, %207 : vector<8x64xf32>
    %210 = math.tanh %209 : vector<8x64xf32>
    %cst_84 = arith.constant 1.000000e+00 : f32
    %211 = vector.broadcast %cst_84 : f32 to vector<8x64xf32>
    %212 = arith.addf %211, %210 : vector<8x64xf32>
    %213 = arith.mulf %202, %212 : vector<8x64xf32>
    %c0_85 = arith.constant 0 : index
    %c0_86 = arith.constant 0 : index
    %c0_87 = arith.constant 0 : index
    %214 = vector.load %arg16[%c0_85, %c0_86, %c0_87] : memref<2x64x32xf32, #tpu.memory_space<vmem>>, vector<1x64x32xf32>
    %215 = vector.shape_cast %214 : vector<1x64x32xf32> to vector<64x32xf32>
    %c0_88 = arith.constant 0 : index
    %c0_89 = arith.constant 0 : index
    %c0_90 = arith.constant 0 : index
    %216 = vector.load %arg17[%c0_88, %c0_89, %c0_90] : memref<2x1x32xf32, #tpu.memory_space<vmem>>, vector<1x1x32xf32>
    %217 = vector.shape_cast %216 : vector<1x1x32xf32> to vector<1x32xf32>
    %218 = arith.truncf %213 : vector<8x64xf32> to vector<8x64xbf16>
    %219 = arith.truncf %215 : vector<64x32xf32> to vector<64x32xbf16>
    %cst_91 = arith.constant dense<0.000000e+00> : vector<8x32xf32>
    %220 = tpu.matmul %218, %219, %cst_91 {dimension_numbers = #tpu.dot_dimension_numbers<[1], [0], [0], [1], [0, 0, 1, 1], [], []>} : vector<8x64xbf16>, vector<64x32xbf16>, vector<8x32xf32> -> vector<8x32xf32>
    %221 = vector.broadcast %217 : vector<1x32xf32> to vector<8x32xf32>
    %222 = arith.addf %220, %221 : vector<8x32xf32>
    %223 = arith.addf %222, %191 : vector<8x32xf32>
    %c0_92 = arith.constant 0 : index
    %c0_93 = arith.constant 0 : index
    %c0_94 = arith.constant 0 : index
    %224 = vector.load %arg18[%c0_92, %c0_93, %c0_94] : memref<2x1x32xf32, #tpu.memory_space<vmem>>, vector<1x1x32xf32>
    %225 = vector.shape_cast %224 : vector<1x1x32xf32> to vector<1x32xf32>
    %c0_95 = arith.constant 0 : index
    %c0_96 = arith.constant 0 : index
    %c0_97 = arith.constant 0 : index
    %226 = vector.load %arg19[%c0_95, %c0_96, %c0_97] : memref<2x1x32xf32, #tpu.memory_space<vmem>>, vector<1x1x32xf32>
    %227 = vector.shape_cast %226 : vector<1x1x32xf32> to vector<1x32xf32>
    %cst_98 = arith.constant dense<0.000000e+00> : vector<8xf32>
    %228 = vector.multi_reduction <add>, %223, %cst_98 [1] : vector<8x32xf32> to vector<8xf32>
    %229 = vector.shape_cast %228 : vector<8xf32> to vector<8x1xf32>
    %cst_99 = arith.constant 3.200000e+01 : f32
    %230 = vector.broadcast %cst_99 : f32 to vector<8x1xf32>
    %231 = arith.divf %229, %230 : vector<8x1xf32>
    %232 = vector.broadcast %231 : vector<8x1xf32> to vector<8x32xf32>
    %233 = arith.subf %223, %232 : vector<8x32xf32>
    %234 = arith.mulf %233, %233 : vector<8x32xf32>
    %cst_100 = arith.constant dense<0.000000e+00> : vector<8xf32>
    %235 = vector.multi_reduction <add>, %234, %cst_100 [1] : vector<8x32xf32> to vector<8xf32>
    %236 = vector.shape_cast %235 : vector<8xf32> to vector<8x1xf32>
    %cst_101 = arith.constant 3.200000e+01 : f32
    %237 = vector.broadcast %cst_101 : f32 to vector<8x1xf32>
    %238 = arith.divf %236, %237 : vector<8x1xf32>
    %cst_102 = arith.constant 9.99999974E-6 : f32
    %239 = vector.broadcast %cst_102 : f32 to vector<8x1xf32>
    %240 = arith.addf %238, %239 : vector<8x1xf32>
    %241 = math.rsqrt %240 : vector<8x1xf32>
    %242 = vector.broadcast %241 : vector<8x1xf32> to vector<8x32xf32>
    %243 = arith.mulf %233, %242 : vector<8x32xf32>
    %244 = vector.broadcast %225 : vector<1x32xf32> to vector<8x32xf32>
    %245 = arith.mulf %243, %244 : vector<8x32xf32>
    %246 = vector.broadcast %227 : vector<1x32xf32> to vector<8x32xf32>
    %247 = arith.addf %245, %246 : vector<8x32xf32>
    %c1 = arith.constant 1 : index
    %c0_103 = arith.constant 0 : index
    %c0_104 = arith.constant 0 : index
    %248 = vector.load %arg8[%c1, %c0_103, %c0_104] : memref<2x32x96xf32, #tpu.memory_space<vmem>>, vector<1x32x96xf32>
    %249 = vector.shape_cast %248 : vector<1x32x96xf32> to vector<32x96xf32>
    %c1_105 = arith.constant 1 : index
    %c0_106 = arith.constant 0 : index
    %c0_107 = arith.constant 0 : index
    %250 = vector.load %arg9[%c1_105, %c0_106, %c0_107] : memref<2x1x96xf32, #tpu.memory_space<vmem>>, vector<1x1x96xf32>
    %251 = vector.shape_cast %250 : vector<1x1x96xf32> to vector<1x96xf32>
    %252 = arith.truncf %247 : vector<8x32xf32> to vector<8x32xbf16>
    %253 = arith.truncf %249 : vector<32x96xf32> to vector<32x96xbf16>
    %cst_108 = arith.constant dense<0.000000e+00> : vector<8x96xf32>
    %254 = tpu.matmul %252, %253, %cst_108 {dimension_numbers = #tpu.dot_dimension_numbers<[1], [0], [0], [1], [0, 0, 1, 1], [], []>} : vector<8x32xbf16>, vector<32x96xbf16>, vector<8x96xf32> -> vector<8x96xf32>
    %255 = vector.broadcast %251 : vector<1x96xf32> to vector<8x96xf32>
    %256 = arith.addf %254, %255 : vector<8x96xf32>
    %257 = vector.extract_strided_slice %256 {offsets = [0, 0], sizes = [8, 8], strides = [1, 1]} : vector<8x96xf32> to vector<8x8xf32>
    %258 = vector.extract_strided_slice %256 {offsets = [0, 32], sizes = [8, 8], strides = [1, 1]} : vector<8x96xf32> to vector<8x8xf32>
    %259 = vector.extract_strided_slice %256 {offsets = [0, 64], sizes = [8, 8], strides = [1, 1]} : vector<8x96xf32> to vector<8x8xf32>
    %260 = arith.truncf %257 : vector<8x8xf32> to vector<8x8xbf16>
    %261 = arith.truncf %258 : vector<8x8xf32> to vector<8x8xbf16>
    %cst_109 = arith.constant dense<0.000000e+00> : vector<8x8xf32>
    %262 = tpu.matmul %260, %261, %cst_109 {dimension_numbers = #tpu.dot_dimension_numbers<[1], [1], [0], [0], [0, 0, 1, 0], [], []>} : vector<8x8xbf16>, vector<8x8xbf16>, vector<8x8xf32> -> vector<8x8xf32>
    %cst_110 = arith.constant 0.353553385 : f32
    %263 = vector.broadcast %cst_110 : f32 to vector<8x8xf32>
    %264 = arith.mulf %262, %263 : vector<8x8xf32>
    %265 = vector.broadcast %55 : vector<1x8xf32> to vector<8x8xf32>
    %266 = arith.addf %264, %265 : vector<8x8xf32>
    %cst_111 = arith.constant dense<0xFF800000> : vector<8xf32>
    %267 = vector.multi_reduction <maximumf>, %266, %cst_111 [1] : vector<8x8xf32> to vector<8xf32>
    %268 = vector.shape_cast %267 : vector<8xf32> to vector<8x1xf32>
    %269 = vector.broadcast %268 : vector<8x1xf32> to vector<8x8xf32>
    %270 = arith.subf %266, %269 : vector<8x8xf32>
    %271 = math.exp %270 : vector<8x8xf32>
    %cst_112 = arith.constant dense<0.000000e+00> : vector<8xf32>
    %272 = vector.multi_reduction <add>, %271, %cst_112 [1] : vector<8x8xf32> to vector<8xf32>
    %273 = vector.shape_cast %272 : vector<8xf32> to vector<8x1xf32>
    %274 = tpu.reciprocal %273 {approx = true} : vector<8x1xf32> -> vector<8x1xf32>
    %275 = vector.broadcast %274 : vector<8x1xf32> to vector<8x8xf32>
    %276 = arith.mulf %271, %275 : vector<8x8xf32>
    %277 = arith.truncf %276 : vector<8x8xf32> to vector<8x8xbf16>
    %278 = arith.truncf %259 : vector<8x8xf32> to vector<8x8xbf16>
    %cst_113 = arith.constant dense<0.000000e+00> : vector<8x8xf32>
    %279 = tpu.matmul %277, %278, %cst_113 {dimension_numbers = #tpu.dot_dimension_numbers<[1], [0], [0], [1], [0, 0, 1, 1], [], []>} : vector<8x8xbf16>, vector<8x8xbf16>, vector<8x8xf32> -> vector<8x8xf32>
    %280 = vector.extract_strided_slice %256 {offsets = [0, 8], sizes = [8, 8], strides = [1, 1]} : vector<8x96xf32> to vector<8x8xf32>
    %281 = vector.extract_strided_slice %256 {offsets = [0, 40], sizes = [8, 8], strides = [1, 1]} : vector<8x96xf32> to vector<8x8xf32>
    %282 = vector.extract_strided_slice %256 {offsets = [0, 72], sizes = [8, 8], strides = [1, 1]} : vector<8x96xf32> to vector<8x8xf32>
    %283 = arith.truncf %280 : vector<8x8xf32> to vector<8x8xbf16>
    %284 = arith.truncf %281 : vector<8x8xf32> to vector<8x8xbf16>
    %cst_114 = arith.constant dense<0.000000e+00> : vector<8x8xf32>
    %285 = tpu.matmul %283, %284, %cst_114 {dimension_numbers = #tpu.dot_dimension_numbers<[1], [1], [0], [0], [0, 0, 1, 0], [], []>} : vector<8x8xbf16>, vector<8x8xbf16>, vector<8x8xf32> -> vector<8x8xf32>
    %cst_115 = arith.constant 0.353553385 : f32
    %286 = vector.broadcast %cst_115 : f32 to vector<8x8xf32>
    %287 = arith.mulf %285, %286 : vector<8x8xf32>
    %288 = vector.broadcast %55 : vector<1x8xf32> to vector<8x8xf32>
    %289 = arith.addf %287, %288 : vector<8x8xf32>
    %cst_116 = arith.constant dense<0xFF800000> : vector<8xf32>
    %290 = vector.multi_reduction <maximumf>, %289, %cst_116 [1] : vector<8x8xf32> to vector<8xf32>
    %291 = vector.shape_cast %290 : vector<8xf32> to vector<8x1xf32>
    %292 = vector.broadcast %291 : vector<8x1xf32> to vector<8x8xf32>
    %293 = arith.subf %289, %292 : vector<8x8xf32>
    %294 = math.exp %293 : vector<8x8xf32>
    %cst_117 = arith.constant dense<0.000000e+00> : vector<8xf32>
    %295 = vector.multi_reduction <add>, %294, %cst_117 [1] : vector<8x8xf32> to vector<8xf32>
    %296 = vector.shape_cast %295 : vector<8xf32> to vector<8x1xf32>
    %297 = tpu.reciprocal %296 {approx = true} : vector<8x1xf32> -> vector<8x1xf32>
    %298 = vector.broadcast %297 : vector<8x1xf32> to vector<8x8xf32>
    %299 = arith.mulf %294, %298 : vector<8x8xf32>
    %300 = arith.truncf %299 : vector<8x8xf32> to vector<8x8xbf16>
    %301 = arith.truncf %282 : vector<8x8xf32> to vector<8x8xbf16>
    %cst_118 = arith.constant dense<0.000000e+00> : vector<8x8xf32>
    %302 = tpu.matmul %300, %301, %cst_118 {dimension_numbers = #tpu.dot_dimension_numbers<[1], [0], [0], [1], [0, 0, 1, 1], [], []>} : vector<8x8xbf16>, vector<8x8xbf16>, vector<8x8xf32> -> vector<8x8xf32>
    %303 = vector.extract_strided_slice %256 {offsets = [0, 16], sizes = [8, 8], strides = [1, 1]} : vector<8x96xf32> to vector<8x8xf32>
    %304 = vector.extract_strided_slice %256 {offsets = [0, 48], sizes = [8, 8], strides = [1, 1]} : vector<8x96xf32> to vector<8x8xf32>
    %305 = vector.extract_strided_slice %256 {offsets = [0, 80], sizes = [8, 8], strides = [1, 1]} : vector<8x96xf32> to vector<8x8xf32>
    %306 = arith.truncf %303 : vector<8x8xf32> to vector<8x8xbf16>
    %307 = arith.truncf %304 : vector<8x8xf32> to vector<8x8xbf16>
    %cst_119 = arith.constant dense<0.000000e+00> : vector<8x8xf32>
    %308 = tpu.matmul %306, %307, %cst_119 {dimension_numbers = #tpu.dot_dimension_numbers<[1], [1], [0], [0], [0, 0, 1, 0], [], []>} : vector<8x8xbf16>, vector<8x8xbf16>, vector<8x8xf32> -> vector<8x8xf32>
    %cst_120 = arith.constant 0.353553385 : f32
    %309 = vector.broadcast %cst_120 : f32 to vector<8x8xf32>
    %310 = arith.mulf %308, %309 : vector<8x8xf32>
    %311 = vector.broadcast %55 : vector<1x8xf32> to vector<8x8xf32>
    %312 = arith.addf %310, %311 : vector<8x8xf32>
    %cst_121 = arith.constant dense<0xFF800000> : vector<8xf32>
    %313 = vector.multi_reduction <maximumf>, %312, %cst_121 [1] : vector<8x8xf32> to vector<8xf32>
    %314 = vector.shape_cast %313 : vector<8xf32> to vector<8x1xf32>
    %315 = vector.broadcast %314 : vector<8x1xf32> to vector<8x8xf32>
    %316 = arith.subf %312, %315 : vector<8x8xf32>
    %317 = math.exp %316 : vector<8x8xf32>
    %cst_122 = arith.constant dense<0.000000e+00> : vector<8xf32>
    %318 = vector.multi_reduction <add>, %317, %cst_122 [1] : vector<8x8xf32> to vector<8xf32>
    %319 = vector.shape_cast %318 : vector<8xf32> to vector<8x1xf32>
    %320 = tpu.reciprocal %319 {approx = true} : vector<8x1xf32> -> vector<8x1xf32>
    %321 = vector.broadcast %320 : vector<8x1xf32> to vector<8x8xf32>
    %322 = arith.mulf %317, %321 : vector<8x8xf32>
    %323 = arith.truncf %322 : vector<8x8xf32> to vector<8x8xbf16>
    %324 = arith.truncf %305 : vector<8x8xf32> to vector<8x8xbf16>
    %cst_123 = arith.constant dense<0.000000e+00> : vector<8x8xf32>
    %325 = tpu.matmul %323, %324, %cst_123 {dimension_numbers = #tpu.dot_dimension_numbers<[1], [0], [0], [1], [0, 0, 1, 1], [], []>} : vector<8x8xbf16>, vector<8x8xbf16>, vector<8x8xf32> -> vector<8x8xf32>
    %326 = vector.extract_strided_slice %256 {offsets = [0, 24], sizes = [8, 8], strides = [1, 1]} : vector<8x96xf32> to vector<8x8xf32>
    %327 = vector.extract_strided_slice %256 {offsets = [0, 56], sizes = [8, 8], strides = [1, 1]} : vector<8x96xf32> to vector<8x8xf32>
    %328 = vector.extract_strided_slice %256 {offsets = [0, 88], sizes = [8, 8], strides = [1, 1]} : vector<8x96xf32> to vector<8x8xf32>
    %329 = arith.truncf %326 : vector<8x8xf32> to vector<8x8xbf16>
    %330 = arith.truncf %327 : vector<8x8xf32> to vector<8x8xbf16>
    %cst_124 = arith.constant dense<0.000000e+00> : vector<8x8xf32>
    %331 = tpu.matmul %329, %330, %cst_124 {dimension_numbers = #tpu.dot_dimension_numbers<[1], [1], [0], [0], [0, 0, 1, 0], [], []>} : vector<8x8xbf16>, vector<8x8xbf16>, vector<8x8xf32> -> vector<8x8xf32>
    %cst_125 = arith.constant 0.353553385 : f32
    %332 = vector.broadcast %cst_125 : f32 to vector<8x8xf32>
    %333 = arith.mulf %331, %332 : vector<8x8xf32>
    %334 = vector.broadcast %55 : vector<1x8xf32> to vector<8x8xf32>
    %335 = arith.addf %333, %334 : vector<8x8xf32>
    %cst_126 = arith.constant dense<0xFF800000> : vector<8xf32>
    %336 = vector.multi_reduction <maximumf>, %335, %cst_126 [1] : vector<8x8xf32> to vector<8xf32>
    %337 = vector.shape_cast %336 : vector<8xf32> to vector<8x1xf32>
    %338 = vector.broadcast %337 : vector<8x1xf32> to vector<8x8xf32>
    %339 = arith.subf %335, %338 : vector<8x8xf32>
    %340 = math.exp %339 : vector<8x8xf32>
    %cst_127 = arith.constant dense<0.000000e+00> : vector<8xf32>
    %341 = vector.multi_reduction <add>, %340, %cst_127 [1] : vector<8x8xf32> to vector<8xf32>
    %342 = vector.shape_cast %341 : vector<8xf32> to vector<8x1xf32>
    %343 = tpu.reciprocal %342 {approx = true} : vector<8x1xf32> -> vector<8x1xf32>
    %344 = vector.broadcast %343 : vector<8x1xf32> to vector<8x8xf32>
    %345 = arith.mulf %340, %344 : vector<8x8xf32>
    %346 = arith.truncf %345 : vector<8x8xf32> to vector<8x8xbf16>
    %347 = arith.truncf %328 : vector<8x8xf32> to vector<8x8xbf16>
    %cst_128 = arith.constant dense<0.000000e+00> : vector<8x8xf32>
    %348 = tpu.matmul %346, %347, %cst_128 {dimension_numbers = #tpu.dot_dimension_numbers<[1], [0], [0], [1], [0, 0, 1, 1], [], []>} : vector<8x8xbf16>, vector<8x8xbf16>, vector<8x8xf32> -> vector<8x8xf32>
    %349 = tpu.concatenate %279, %302, %325, %348 in 1 : vector<8x8xf32>, vector<8x8xf32>, vector<8x8xf32>, vector<8x8xf32> -> vector<8x32xf32>
    %c1_129 = arith.constant 1 : index
    %c0_130 = arith.constant 0 : index
    %c0_131 = arith.constant 0 : index
    %350 = vector.load %arg10[%c1_129, %c0_130, %c0_131] : memref<2x32x32xf32, #tpu.memory_space<vmem>>, vector<1x32x32xf32>
    %351 = vector.shape_cast %350 : vector<1x32x32xf32> to vector<32x32xf32>
    %c1_132 = arith.constant 1 : index
    %c0_133 = arith.constant 0 : index
    %c0_134 = arith.constant 0 : index
    %352 = vector.load %arg11[%c1_132, %c0_133, %c0_134] : memref<2x1x32xf32, #tpu.memory_space<vmem>>, vector<1x1x32xf32>
    %353 = vector.shape_cast %352 : vector<1x1x32xf32> to vector<1x32xf32>
    %354 = arith.truncf %349 : vector<8x32xf32> to vector<8x32xbf16>
    %355 = arith.truncf %351 : vector<32x32xf32> to vector<32x32xbf16>
    %cst_135 = arith.constant dense<0.000000e+00> : vector<8x32xf32>
    %356 = tpu.matmul %354, %355, %cst_135 {dimension_numbers = #tpu.dot_dimension_numbers<[1], [0], [0], [1], [0, 0, 1, 1], [], []>} : vector<8x32xbf16>, vector<32x32xbf16>, vector<8x32xf32> -> vector<8x32xf32>
    %357 = vector.broadcast %353 : vector<1x32xf32> to vector<8x32xf32>
    %358 = arith.addf %356, %357 : vector<8x32xf32>
    %359 = arith.addf %358, %247 : vector<8x32xf32>
    %c1_136 = arith.constant 1 : index
    %c0_137 = arith.constant 0 : index
    %c0_138 = arith.constant 0 : index
    %360 = vector.load %arg12[%c1_136, %c0_137, %c0_138] : memref<2x1x32xf32, #tpu.memory_space<vmem>>, vector<1x1x32xf32>
    %361 = vector.shape_cast %360 : vector<1x1x32xf32> to vector<1x32xf32>
    %c1_139 = arith.constant 1 : index
    %c0_140 = arith.constant 0 : index
    %c0_141 = arith.constant 0 : index
    %362 = vector.load %arg13[%c1_139, %c0_140, %c0_141] : memref<2x1x32xf32, #tpu.memory_space<vmem>>, vector<1x1x32xf32>
    %363 = vector.shape_cast %362 : vector<1x1x32xf32> to vector<1x32xf32>
    %cst_142 = arith.constant dense<0.000000e+00> : vector<8xf32>
    %364 = vector.multi_reduction <add>, %359, %cst_142 [1] : vector<8x32xf32> to vector<8xf32>
    %365 = vector.shape_cast %364 : vector<8xf32> to vector<8x1xf32>
    %cst_143 = arith.constant 3.200000e+01 : f32
    %366 = vector.broadcast %cst_143 : f32 to vector<8x1xf32>
    %367 = arith.divf %365, %366 : vector<8x1xf32>
    %368 = vector.broadcast %367 : vector<8x1xf32> to vector<8x32xf32>
    %369 = arith.subf %359, %368 : vector<8x32xf32>
    %370 = arith.mulf %369, %369 : vector<8x32xf32>
    %cst_144 = arith.constant dense<0.000000e+00> : vector<8xf32>
    %371 = vector.multi_reduction <add>, %370, %cst_144 [1] : vector<8x32xf32> to vector<8xf32>
    %372 = vector.shape_cast %371 : vector<8xf32> to vector<8x1xf32>
    %cst_145 = arith.constant 3.200000e+01 : f32
    %373 = vector.broadcast %cst_145 : f32 to vector<8x1xf32>
    %374 = arith.divf %372, %373 : vector<8x1xf32>
    %cst_146 = arith.constant 9.99999974E-6 : f32
    %375 = vector.broadcast %cst_146 : f32 to vector<8x1xf32>
    %376 = arith.addf %374, %375 : vector<8x1xf32>
    %377 = math.rsqrt %376 : vector<8x1xf32>
    %378 = vector.broadcast %377 : vector<8x1xf32> to vector<8x32xf32>
    %379 = arith.mulf %369, %378 : vector<8x32xf32>
    %380 = vector.broadcast %361 : vector<1x32xf32> to vector<8x32xf32>
    %381 = arith.mulf %379, %380 : vector<8x32xf32>
    %382 = vector.broadcast %363 : vector<1x32xf32> to vector<8x32xf32>
    %383 = arith.addf %381, %382 : vector<8x32xf32>
    %c1_147 = arith.constant 1 : index
    %c0_148 = arith.constant 0 : index
    %c0_149 = arith.constant 0 : index
    %384 = vector.load %arg14[%c1_147, %c0_148, %c0_149] : memref<2x32x64xf32, #tpu.memory_space<vmem>>, vector<1x32x64xf32>
    %385 = vector.shape_cast %384 : vector<1x32x64xf32> to vector<32x64xf32>
    %c1_150 = arith.constant 1 : index
    %c0_151 = arith.constant 0 : index
    %c0_152 = arith.constant 0 : index
    %386 = vector.load %arg15[%c1_150, %c0_151, %c0_152] : memref<2x1x64xf32, #tpu.memory_space<vmem>>, vector<1x1x64xf32>
    %387 = vector.shape_cast %386 : vector<1x1x64xf32> to vector<1x64xf32>
    %388 = arith.truncf %383 : vector<8x32xf32> to vector<8x32xbf16>
    %389 = arith.truncf %385 : vector<32x64xf32> to vector<32x64xbf16>
    %cst_153 = arith.constant dense<0.000000e+00> : vector<8x64xf32>
    %390 = tpu.matmul %388, %389, %cst_153 {dimension_numbers = #tpu.dot_dimension_numbers<[1], [0], [0], [1], [0, 0, 1, 1], [], []>} : vector<8x32xbf16>, vector<32x64xbf16>, vector<8x64xf32> -> vector<8x64xf32>
    %391 = vector.broadcast %387 : vector<1x64xf32> to vector<8x64xf32>
    %392 = arith.addf %390, %391 : vector<8x64xf32>
    %cst_154 = arith.constant 5.000000e-01 : f32
    %393 = vector.broadcast %cst_154 : f32 to vector<8x64xf32>
    %394 = arith.mulf %393, %392 : vector<8x64xf32>
    %cst_155 = arith.constant 4.471500e-02 : f32
    %395 = vector.broadcast %cst_155 : f32 to vector<8x64xf32>
    %396 = arith.mulf %395, %392 : vector<8x64xf32>
    %397 = arith.mulf %396, %392 : vector<8x64xf32>
    %398 = arith.mulf %397, %392 : vector<8x64xf32>
    %399 = arith.addf %392, %398 : vector<8x64xf32>
    %cst_156 = arith.constant 0.797884583 : f32
    %400 = vector.broadcast %cst_156 : f32 to vector<8x64xf32>
    %401 = arith.mulf %400, %399 : vector<8x64xf32>
    %402 = math.tanh %401 : vector<8x64xf32>
    %cst_157 = arith.constant 1.000000e+00 : f32
    %403 = vector.broadcast %cst_157 : f32 to vector<8x64xf32>
    %404 = arith.addf %403, %402 : vector<8x64xf32>
    %405 = arith.mulf %394, %404 : vector<8x64xf32>
    %c1_158 = arith.constant 1 : index
    %c0_159 = arith.constant 0 : index
    %c0_160 = arith.constant 0 : index
    %406 = vector.load %arg16[%c1_158, %c0_159, %c0_160] : memref<2x64x32xf32, #tpu.memory_space<vmem>>, vector<1x64x32xf32>
    %407 = vector.shape_cast %406 : vector<1x64x32xf32> to vector<64x32xf32>
    %c1_161 = arith.constant 1 : index
    %c0_162 = arith.constant 0 : index
    %c0_163 = arith.constant 0 : index
    %408 = vector.load %arg17[%c1_161, %c0_162, %c0_163] : memref<2x1x32xf32, #tpu.memory_space<vmem>>, vector<1x1x32xf32>
    %409 = vector.shape_cast %408 : vector<1x1x32xf32> to vector<1x32xf32>
    %410 = arith.truncf %405 : vector<8x64xf32> to vector<8x64xbf16>
    %411 = arith.truncf %407 : vector<64x32xf32> to vector<64x32xbf16>
    %cst_164 = arith.constant dense<0.000000e+00> : vector<8x32xf32>
    %412 = tpu.matmul %410, %411, %cst_164 {dimension_numbers = #tpu.dot_dimension_numbers<[1], [0], [0], [1], [0, 0, 1, 1], [], []>} : vector<8x64xbf16>, vector<64x32xbf16>, vector<8x32xf32> -> vector<8x32xf32>
    %413 = vector.broadcast %409 : vector<1x32xf32> to vector<8x32xf32>
    %414 = arith.addf %412, %413 : vector<8x32xf32>
    %415 = arith.addf %414, %383 : vector<8x32xf32>
    %c1_165 = arith.constant 1 : index
    %c0_166 = arith.constant 0 : index
    %c0_167 = arith.constant 0 : index
    %416 = vector.load %arg18[%c1_165, %c0_166, %c0_167] : memref<2x1x32xf32, #tpu.memory_space<vmem>>, vector<1x1x32xf32>
    %417 = vector.shape_cast %416 : vector<1x1x32xf32> to vector<1x32xf32>
    %c1_168 = arith.constant 1 : index
    %c0_169 = arith.constant 0 : index
    %c0_170 = arith.constant 0 : index
    %418 = vector.load %arg19[%c1_168, %c0_169, %c0_170] : memref<2x1x32xf32, #tpu.memory_space<vmem>>, vector<1x1x32xf32>
    %419 = vector.shape_cast %418 : vector<1x1x32xf32> to vector<1x32xf32>
    %cst_171 = arith.constant dense<0.000000e+00> : vector<8xf32>
    %420 = vector.multi_reduction <add>, %415, %cst_171 [1] : vector<8x32xf32> to vector<8xf32>
    %421 = vector.shape_cast %420 : vector<8xf32> to vector<8x1xf32>
    %cst_172 = arith.constant 3.200000e+01 : f32
    %422 = vector.broadcast %cst_172 : f32 to vector<8x1xf32>
    %423 = arith.divf %421, %422 : vector<8x1xf32>
    %424 = vector.broadcast %423 : vector<8x1xf32> to vector<8x32xf32>
    %425 = arith.subf %415, %424 : vector<8x32xf32>
    %426 = arith.mulf %425, %425 : vector<8x32xf32>
    %cst_173 = arith.constant dense<0.000000e+00> : vector<8xf32>
    %427 = vector.multi_reduction <add>, %426, %cst_173 [1] : vector<8x32xf32> to vector<8xf32>
    %428 = vector.shape_cast %427 : vector<8xf32> to vector<8x1xf32>
    %cst_174 = arith.constant 3.200000e+01 : f32
    %429 = vector.broadcast %cst_174 : f32 to vector<8x1xf32>
    %430 = arith.divf %428, %429 : vector<8x1xf32>
    %cst_175 = arith.constant 9.99999974E-6 : f32
    %431 = vector.broadcast %cst_175 : f32 to vector<8x1xf32>
    %432 = arith.addf %430, %431 : vector<8x1xf32>
    %433 = math.rsqrt %432 : vector<8x1xf32>
    %434 = vector.broadcast %433 : vector<8x1xf32> to vector<8x32xf32>
    %435 = arith.mulf %425, %434 : vector<8x32xf32>
    %436 = vector.broadcast %417 : vector<1x32xf32> to vector<8x32xf32>
    %437 = arith.mulf %435, %436 : vector<8x32xf32>
    %438 = vector.broadcast %419 : vector<1x32xf32> to vector<8x32xf32>
    %439 = arith.addf %437, %438 : vector<8x32xf32>
    %440 = vector.extract_strided_slice %439 {offsets = [0, 0], sizes = [1, 32], strides = [1, 1]} : vector<8x32xf32> to vector<1x32xf32>
    %c0_176 = arith.constant 0 : index
    %c0_177 = arith.constant 0 : index
    %c0_178 = arith.constant 0 : index
    %441 = vector.load %arg20[%c0_176, %c0_177, %c0_178] : memref<1x1x32xf32, #tpu.memory_space<vmem>>, vector<1x1x32xf32>
    %442 = vector.shape_cast %441 : vector<1x1x32xf32> to vector<1x32xf32>
    %443 = vector.shape_cast %440 : vector<1x32xf32> to vector<1x1x32xf32>
    tpu.vector_store %arg20[%c0_176, %c0_177, %c0_178], %443 {strides = array<i32>} : memref<1x1x32xf32, #tpu.memory_space<vmem>>, vector<1x1x32xf32>,
    return
  }
  func.func @transform_0(%arg0: i32) -> (i32, i32, i32) {
    %c0_i32 = arith.constant 0 : i32
    %c0_i32_0 = arith.constant 0 : i32
    %c0_i32_1 = arith.constant 0 : i32
    return %arg0, %c0_i32, %c0_i32_0 : i32, i32, i32
  }
  func.func @transform_1(%arg0: i32) -> (i32, i32, i32) {
    %c0_i32 = arith.constant 0 : i32
    %c0_i32_0 = arith.constant 0 : i32
    %c0_i32_1 = arith.constant 0 : i32
    return %arg0, %c0_i32, %c0_i32_0 : i32, i32, i32
  }
  func.func @transform_2(%arg0: i32) -> (i32, i32, i32) {
    %c0_i32 = arith.constant 0 : i32
    %c0_i32_0 = arith.constant 0 : i32
    %c0_i32_1 = arith.constant 0 : i32
    return %arg0, %c0_i32, %c0_i32_0 : i32, i32, i32
  }
  func.func @transform_3(%arg0: i32) -> (i32, i32) {
    %c0_i32 = arith.constant 0 : i32
    %c0_i32_0 = arith.constant 0 : i32
    %c0_i32_1 = arith.constant 0 : i32
    return %c0_i32, %c0_i32_0 : i32, i32
  }
  func.func @transform_4(%arg0: i32) -> (i32, i32) {
    %c0_i32 = arith.constant 0 : i32
    %c0_i32_0 = arith.constant 0 : i32
    %c0_i32_1 = arith.constant 0 : i32
    return %c0_i32, %c0_i32_0 : i32, i32
  }
  func.func @transform_5(%arg0: i32) -> (i32, i32) {
    %c0_i32 = arith.constant 0 : i32
    %c0_i32_0 = arith.constant 0 : i32
    %c0_i32_1 = arith.constant 0 : i32
    return %c0_i32, %c0_i32_0 : i32, i32
  }
  func.func @transform_6(%arg0: i32) -> (i32, i32) {
    %c0_i32 = arith.constant 0 : i32
    %c0_i32_0 = arith.constant 0 : i32
    %c0_i32_1 = arith.constant 0 : i32
    return %c0_i32, %c0_i32_0 : i32, i32
  }
  func.func @transform_7(%arg0: i32) -> (i32, i32, i32) {
    %c0_i32 = arith.constant 0 : i32
    %c0_i32_0 = arith.constant 0 : i32
    %c0_i32_1 = arith.constant 0 : i32
    %c0_i32_2 = arith.constant 0 : i32
    return %c0_i32, %c0_i32_0, %c0_i32_1 : i32, i32, i32
  }
  func.func @transform_8(%arg0: i32) -> (i32, i32, i32) {
    %c0_i32 = arith.constant 0 : i32
    %c0_i32_0 = arith.constant 0 : i32
    %c0_i32_1 = arith.constant 0 : i32
    %c0_i32_2 = arith.constant 0 : i32
    return %c0_i32, %c0_i32_0, %c0_i32_1 : i32, i32, i32
  }
  func.func @transform_9(%arg0: i32) -> (i32, i32, i32) {
    %c0_i32 = arith.constant 0 : i32
    %c0_i32_0 = arith.constant 0 : i32
    %c0_i32_1 = arith.constant 0 : i32
    %c0_i32_2 = arith.constant 0 : i32
    return %c0_i32, %c0_i32_0, %c0_i32_1 : i32, i32, i32
  }
  func.func @transform_10(%arg0: i32) -> (i32, i32, i32) {
    %c0_i32 = arith.constant 0 : i32
    %c0_i32_0 = arith.constant 0 : i32
    %c0_i32_1 = arith.constant 0 : i32
    %c0_i32_2 = arith.constant 0 : i32
    return %c0_i32, %c0_i32_0, %c0_i32_1 : i32, i32, i32
  }
  func.func @transform_11(%arg0: i32) -> (i32, i32, i32) {
    %c0_i32 = arith.constant 0 : i32
    %c0_i32_0 = arith.constant 0 : i32
    %c0_i32_1 = arith.constant 0 : i32
    %c0_i32_2 = arith.constant 0 : i32
    return %c0_i32, %c0_i32_0, %c0_i32_1 : i32, i32, i32
  }
  func.func @transform_12(%arg0: i32) -> (i32, i32, i32) {
    %c0_i32 = arith.constant 0 : i32
    %c0_i32_0 = arith.constant 0 : i32
    %c0_i32_1 = arith.constant 0 : i32
    %c0_i32_2 = arith.constant 0 : i32
    return %c0_i32, %c0_i32_0, %c0_i32_1 : i32, i32, i32
  }
  func.func @transform_13(%arg0: i32) -> (i32, i32, i32) {
    %c0_i32 = arith.constant 0 : i32
    %c0_i32_0 = arith.constant 0 : i32
    %c0_i32_1 = arith.constant 0 : i32
    %c0_i32_2 = arith.constant 0 : i32
    return %c0_i32, %c0_i32_0, %c0_i32_1 : i32, i32, i32
  }
  func.func @transform_14(%arg0: i32) -> (i32, i32, i32) {
    %c0_i32 = arith.constant 0 : i32
    %c0_i32_0 = arith.constant 0 : i32
    %c0_i32_1 = arith.constant 0 : i32
    %c0_i32_2 = arith.constant 0 : i32
    return %c0_i32, %c0_i32_0, %c0_i32_1 : i32, i32, i32
  }
  func.func @transform_15(%arg0: i32) -> (i32, i32, i32) {
    %c0_i32 = arith.constant 0 : i32
    %c0_i32_0 = arith.constant 0 : i32
    %c0_i32_1 = arith.constant 0 : i32
    %c0_i32_2 = arith.constant 0 : i32
    return %c0_i32, %c0_i32_0, %c0_i32_1 : i32, i32, i32
  }
  func.func @transform_16(%arg0: i32) -> (i32, i32, i32) {
    %c0_i32 = arith.constant 0 : i32
    %c0_i32_0 = arith.constant 0 : i32
    %c0_i32_1 = arith.constant 0 : i32
    %c0_i32_2 = arith.constant 0 : i32
    return %c0_i32, %c0_i32_0, %c0_i32_1 : i32, i32, i32
  }
  func.func @transform_17(%arg0: i32) -> (i32, i32, i32) {
    %c0_i32 = arith.constant 0 : i32
    %c0_i32_0 = arith.constant 0 : i32
    %c0_i32_1 = arith.constant 0 : i32
    %c0_i32_2 = arith.constant 0 : i32
    return %c0_i32, %c0_i32_0, %c0_i32_1 : i32, i32, i32
  }
  func.func @transform_18(%arg0: i32) -> (i32, i32, i32) {
    %c0_i32 = arith.constant 0 : i32
    %c0_i32_0 = arith.constant 0 : i32
    %c0_i32_1 = arith.constant 0 : i32
    %c0_i32_2 = arith.constant 0 : i32
    return %c0_i32, %c0_i32_0, %c0_i32_1 : i32, i32, i32
  }
  func.func @transform_19(%arg0: i32) -> (i32, i32, i32) {
    %c0_i32 = arith.constant 0 : i32
    %c0_i32_0 = arith.constant 0 : i32
    %c0_i32_1 = arith.constant 0 : i32
    return %arg0, %c0_i32, %c0_i32_0 : i32, i32, i32
  }
}

</mosaic_0001>

<bundles_post_ra>
// kernel: smart_roberta_forward.1
= control target key start
LH: loop header
LB: loop body
LE: loop exit
PB: predicated region body
PF: predicated region fallthrough
CT: control target
= control target key end

     0   :  { %s3260_s0 = inlined_call_operand.vmem [shape: f32[4,8,32], index: 0, kind: input, shape index: {}]   ;;  %s3261_s1 = inlined_call_operand.vmem [shape: f32[4,8,32], index: 1, kind: input, shape index: {}]   ;;  %s3262_s2 = inlined_call_operand.vmem [shape: f32[4,1,8], index: 2, kind: input, shape index: {}]   ;;  %s3263_s3 = inlined_call_operand.vmem [shape: f32[8,32], index: 3, kind: input, shape index: {}]   ;;  %s3264_s4 = inlined_call_operand.vmem [shape: f32[1,32], index: 4, kind: input, shape index: {}]   ;;  %s3265_s5 = inlined_call_operand.vmem [shape: f32[1,32], index: 5, kind: input, shape index: {}]   ;;  %s3266_s6 = inlined_call_operand.vmem [shape: f32[1,32], index: 6, kind: input, shape index: {}]   ;;  %s3267_s7 = inlined_call_operand.vmem [shape: f32[2,32,96], index: 7, kind: input, shape index: {}]   ;;  %s3268_s8 = inlined_call_operand.vmem [shape: f32[2,1,96], index: 8, kind: input, shape index: {}]   ;;  %s3269_s9 = inlined_call_operand.vmem [shape: f32[2,32,32], index: 9, kind: input, shape index: {}]   ;;  %s3270_s10 = inlined_call_operand.vmem [shape: f32[2,1,32], index: 10, kind: input, shape index: {}]   ;;  %s3271_s11 = inlined_call_operand.vmem [shape: f32[2,1,32], index: 11, kind: input, shape index: {}]   ;;  %s3272_s12 = inlined_call_operand.vmem [shape: f32[2,1,32], index: 12, kind: input, shape index: {}]   ;;  %s3273_s13 = inlined_call_operand.vmem [shape: f32[2,32,64], index: 13, kind: input, shape index: {}]   ;;  %s3274_s14 = inlined_call_operand.vmem [shape: f32[2,1,64], index: 14, kind: input, shape index: {}]   ;;  %s3275_s15 = inlined_call_operand.vmem [shape: f32[2,64,32], index: 15, kind: input, shape index: {}]   ;;  %s3276_s16 = inlined_call_operand.vmem [shape: f32[2,1,32], index: 16, kind: input, shape index: {}]   ;;  %s3277_s17 = inlined_call_operand.vmem [shape: f32[2,1,32], index: 17, kind: input, shape index: {}]   ;;  %s3278_s18 = inlined_call_operand.vmem [shape: f32[2,1,32], index: 18, kind: input, shape index: {}]   ;;  %s3279_s19 = inlined_call_operand.vmem [shape: f32[4,1,32], index: 19, kind: output, shape index: {}]  }
   0x1   :  { %3290 = sst [smem:[#allocation2_spill]] %s3260_s0  ;;  %s2818_s0 = smov 0  }
   0x2   :  { %3291 = sst [smem:[#allocation3_spill]] %s3261_s1 }
   0x3   :  { %3292 = sst [smem:[#allocation4_spill]] %s3262_s2 }
   0x4   :  { %3293 = sst [smem:[#allocation5_spill]] %s3263_s3 }
   0x5 LB: > { %s2313_s30 = sadd.s32 4294967295, %s2700_s0   ;;  %p2317_p0 = scmp.ge.s32.totalorder %s2700_s0, 1  ;;  %s2700_s0 = sphi %s2818_s0, %s29_s0  }
   0x6   : > { %p553_p1 = scmp.lt.s32.totalorder %s2700_s0, 5 }
   0x8   : > { %p554_p2 = pnand %p2317_p0, %p553_p1 }
   0x9   : > { %p613_p3 = scmp.lt.s32.totalorder (!%p554_p2), %s2313_s30, 3  ;;  %s3294_s22 = sld [smem:[#allocation2_spill]] (!%p554_p2) }
   0xa   : > { %557 = sbr.rel (%p554_p2) target bundleno = 5526 (0x1596), region = 96  ;;  %s3295_s26 = sld [smem:[#allocation3_spill]] (!%p554_p2) }
   0xb   : > { %s2706_s23 = smov (!%p554_p2), 120   ;;  %s3289_s24 = smov (!%p554_p2), 80  }
   0xc   : > { %s3286_s25 = smov (!%p554_p2), 104   ;;  %s3284_s3 = smov (!%p554_p2), 72  }
   0xd   : > { %s3297_s28 = sld [smem:[#allocation4_spill]] (!%p554_p2)  ;;  %s3283_s21 = smov (!%p554_p2), 64  }
   0xe   : > { %s3282_s1 = smov (!%p554_p2), 56  }
   0xf   : > { %s3309_s30 = smov (!%p613_p3, %s2313_s30), 3  ;;  %vm631_vm0 = vcmask 261120   ;;  %v2320_v11 = vld [vmem:[%s3265_s5] ss:$0 sm:$0xff]  ;;  %v690_v28 = vld [vmem:[%s3267_s7 + $0x10] sm:$0xff]  ;;  %v691_v29 = vld [vmem:[%s3267_s7 + $0x18] sm:$0xff] }
  0x10   : > { %s2318_s20 = sshll.u32 %s3309_s30, 3  ;;  %v2321_v13 = vld [vmem:[%s3266_s6] ss:$0 sm:$0xff]  ;;  %v2702_v31 = vmov 0.0   ;;  %v695_v32 = vpack.c.bf16 %v691_v29, %v690_v28  ;;  %v689_v33 = vld [vmem:[%s3267_s7 + $0x8] sm:$0xff]  ;;  %vm2703_vm1 = vmmov 0  }
  0x11   : > { %s616_s2 = scalar_lea.vmem %s3294_s22, %s2318_s20  ;;  %s620_s27 = scalar_lea.vmem %s3295_s26, %s2318_s20  ;;  %v2322_v19 = vld [vmem:[%s3264_s4] ss:$0 sm:$0xff]  ;;  %2454 = vmatprep.subr.bf16.mxu1 %v2702_v31  ;;  %2458 = vmatprep.mubr.msk.bf16.mxu1 %vm2703_vm1, %v2702_v31  ;;  %vm749_vm2 = vcmask 64512   ;;  %vm821_vm3 = vcmask 1043456   ;;  %vm1214_vm4 = vcmask 130048   ;;  %vm1216_vm5 = vcmask 195584  }
  0x12   : > { %v628_v0 = vld [vmem:[%s616_s2] sm:$0xff]  ;;  %s3296_s22 = sld [smem:[#allocation5_spill]]  ;;  %2468 = vmatprep.subr.bf16.mxu0 %v2702_v31  ;;  %2470 = vmatprep.mubr.msk.bf16.mxu0 %vm2703_vm1, %v2702_v31  ;;  %s2705_s2 = smov 96   ;;  %vm1391_vm6 = vcmask 523264   ;;  %vm2243_vm7 = vcmask 253952  }
  0x13   : > { %v632_v1 = vsel %vm631_vm0, %v628_v0, 0.0  ;;  %v660_v15 = vld [vmem:[%s620_s27] sm:$0xff]  ;;  %2455 = vmatpush3.bf16.msra.mxu1 %v695_v32  ;;  %s2707_s20 = smov 112   ;;  %s623_s29 = scalar_lea.vmem %s3297_s28, %s3309_s30 }
  0x14   : > { %633 = vadd.xlane.f32.xlu0 %v632_v1  ;;  %v688_v30 = vld [vmem:[%s3267_s7] sm:$0xff]  ;;  %2456 = vmatprep.subr.bf16.mxu1 %v2702_v31  ;;  %s3281_s26 = smov 48   ;;  %s3280_s27 = smov 40  }
  0x15   : > { %v694_v34 = vpack.c.bf16 %v689_v33, %v688_v30  ;;  %v2323_v43 = vld [vmem:[%s3268_s8] ss:$0 sm:$0xff]  ;;  %s3285_s28 = smov 8  }
  0x16   : > { %v2922_v61 = vld [vmem:[%s623_s29] ss:$0 sm:$0xff]  ;;  %s3305_s29 = smov 8  }
  0x17   : > { %2457 = vmatpush3.bf16.msra.mxu1 %v694_v34 }
  0x18   : > { %v662_v17 = vld [vmem:[%s3296_s22] sm:$0xff]  ;;  %2462 = vmatprep.subr.bf16.mxu1 %v2702_v31  ;;  %s2704_s22 = smov 88  }
  0x9d   : > { %v634_v2 = vpop.xlane.xlu0 %633 }
  0x9e   : > { %v636_v3 = vmul.f32 0.03125, %v634_v2 }
  0xa0   : > { %v637_v4 = vsub.f32 %v628_v0, %v636_v3 }
  0xa2   : > { %v638_v5 = vmul.f32 %v637_v4, %v637_v4 }
  0xa4   : > { %v639_v6 = vsel %vm631_vm0, %v638_v5, 0.0 }
  0xa5   : > { %640 = vadd.xlane.f32.xlu0 %v639_v6 }
 0x12e   : > { %v641_v7 = vpop.xlane.xlu0 %640 }
 0x12f   : > { %v642_v8 = vmul.f32 0.03125, %v641_v7 }
 0x131   : > { %v643_v9 = vadd.f32 1e-05, %v642_v8 }
 0x133   : > { %2646 = vrsqrt.f32 %v643_v9 }
 0x140   : > { %v2647_v10 = vpop.eup %2646 }
 0x141   : > { %v645_v12 = vmul.f32 %v2647_v10, %v637_v4 }
 0x143   : > { %v652_v14 = vmul.f32 %v2320_v11, %v645_v12 }
 0x145   : > { %v659_v16 = vadd.f32 %v2321_v13, %v652_v14 }
 0x147   : > { %v661_v18 = vadd.f32 %v660_v15, %v659_v16 }
 0x149   : > { %v663_v20 = vadd.f32 %v662_v17, %v661_v18 }
 0x14b   : > { %v671_v21 = vadd.f32 %v2322_v19, %v663_v20 }
 0x14d   : > { %v672_v22 = vsel %vm631_vm0, %v671_v21, 0.0 }
 0x14e   : > { %673 = vadd.xlane.f32.xlu1 %v672_v22 }
 0x1d7   : > { %v674_v23 = vpop.xlane.xlu1 %673 }
 0x1d8   : > { %v675_v24 = vmul.f32 0.03125, %v674_v23 }
 0x1da   : > { %v676_v25 = vsub.f32 %v671_v21, %v675_v24 }
 0x1dc   : > { %v677_v26 = vmul.f32 %v676_v25, %v676_v25 }
 0x1de   : > { %v678_v27 = vsel %vm631_vm0, %v677_v26, 0.0 }
 0x1df   : > { %679 = vadd.xlane.f32.xlu1 %v678_v27 }
 0x268   : > { %v680_v35 = vpop.xlane.xlu1 %679 }
 0x269   : > { %v681_v36 = vmul.f32 0.03125, %v680_v35 }
 0x26b   : > { %v682_v37 = vadd.f32 1e-05, %v681_v36 }
 0x26d   : > { %2648 = vrsqrt.f32 %v682_v37 }
 0x27a   : > { %v2649_v38 = vpop.eup %2648 }
 0x27b   : > { %v684_v39 = vmul.f32 %v2649_v38, %v676_v25 }
 0x27d   : > { %v685_v40 = vmul.f32 %v2320_v11, %v684_v39 }
 0x27f   : > { %v2871_v41 = vadd.f32 %v2321_v13, %v685_v40 }
 0x281   : > { %v693_v42 = vpack.c.bf16 %v2871_v41, %v2871_v41 }
 0x283   : > { %2459 = vmatmul.mubr.msk.bf16.vlgmr.msra.gmra.mxu1 %vm631_vm0, %v693_v42 }
 0x284   : > { %2464 = vmatprep.mubr.msk.bf16.mxu1 %vm2703_vm1, %v2702_v31 }
 0x343   : > { %v739_v44 = vpop.f32.mrf.mxu1 }
 0x344   : > { %v740_v45 = vadd.f32 %v2323_v43, %v739_v44 }
 0x345   : > { %v2460_v46 = vpop.f32.mrf.mxu1 }
 0x346   : > { %v2881_v47 = vpack.c.bf16 %v740_v45, %v740_v45 }
 0x347   : > { %v742_v48 = vpop.f32.mrf.mxu1 }
 0x348   : > { %867 = vrot.lane.b32.xlu1 %v2881_v47, %s2704_s22  ;;  %747 = vrot.lane.b32.xlu0 %v2881_v47, %s2705_s2 }
 0x349   : > { %v2461_v49 = vpop.f32.mrf.mxu1 }
 0x34c   : > { %865 = vrot.lane.b32.xlu1 %v2881_v47, %s2706_s23  ;;  %977 = vrot.lane.b32.xlu0 %v2881_v47, %s2707_s20 }
 0x350   : > { %979 = vrot.lane.b32.xlu1 %v2881_v47, %s3289_s24  ;;  %1089 = vrot.lane.b32.xlu0 %v2881_v47, %s3286_s25  ;;  %s3298_s24 = smov 80  }
 0x354   : > { %1091 = vrot.lane.b32.xlu1 %v2881_v47, %s3284_s3 }
 0x3ba   : > { %v748_v50 = vpop.permute.xlu0 %747  ;;  %v868_v52 = vpop.permute.xlu1 %867 }
 0x3bb   : > { %v754_v51 = vsel %vm749_vm2, %v748_v50, 0  ;;  %v873_v54 = vsel %vm749_vm2, %v868_v52, 0 }
 0x3bc   : > { %2463 = vmatpush3.bf16.xpose.msra.mxu1 %v754_v51 }
 0x3bd   : > { %2474 = vmatprep.subr.bf16.mxu1 %v2702_v31 }
 0x3be   : > { %v866_v53 = vpop.permute.xlu1 %865  ;;  %v978_v58 = vpop.permute.xlu0 %977 }
 0x3c2   : > { %v980_v55 = vpop.permute.xlu1 %979  ;;  %v1090_v60 = vpop.permute.xlu0 %1089 }
 0x3c3   : > { %2465 = vmatmul.mubr.msk.bf16.vlgmr.msra.gmra.mxu1 %vm749_vm2, %v2881_v47  ;;  %v985_v56 = vsel %vm749_vm2, %v980_v55, 0 }
 0x3c4   : > { %2475 = vmatpush3.bf16.xpose.msra.mxu1 %v873_v54  ;;  %2476 = vmatprep.mubr.msk.bf16.mxu1 %vm2703_vm1, %v2702_v31 }
 0x3c5   : > { %2486 = vmatprep.subr.bf16.mxu1 %v2702_v31 }
 0x3c6   : > { %v1092_v57 = vpop.permute.xlu1 %1091 }
 0x3c7   : > { %v1097_v59 = vsel %vm749_vm2, %v1092_v57, 0 }
 0x3cb   : > { %2477 = vmatmul.mubr.msk.bf16.vlgmr.msra.gmra.mxu1 %vm749_vm2, %v866_v53 }
 0x3cc   : > { %2487 = vmatpush3.bf16.xpose.msra.mxu1 %v985_v56  ;;  %2488 = vmatprep.mubr.msk.bf16.mxu1 %vm2703_vm1, %v2702_v31 }
 0x3cd   : > { %2498 = vmatprep.subr.bf16.mxu1 %v2702_v31 }
 0x3d3   : > { %2489 = vmatmul.mubr.msk.bf16.vlgmr.msra.gmra.mxu1 %vm749_vm2, %v978_v58 }
 0x3d4   : > { %2499 = vmatpush3.bf16.xpose.msra.mxu1 %v1097_v59  ;;  %2500 = vmatprep.mubr.msk.bf16.mxu1 %vm2703_vm1, %v2702_v31 }
 0x3d5   : > { %2510 = vmatprep.subr.bf16.mxu1 %v2702_v31 }
 0x3db   : > { %2501 = vmatmul.mubr.msk.bf16.vlgmr.msra.gmra.mxu1 %vm749_vm2, %v1090_v60 }
 0x3dc   : > { %2514 = vmatprep.mubr.msk.bf16.mxu1 %vm2703_vm1, %v2702_v31 }
 0x483   : > { %v790_v62 = vpop.f32.mrf.mxu1 }
 0x484   : > { %v796_v63 = vmul.f32 0.35355338, %v790_v62 }
 0x485   : > { %v2466_v0 = vpop.f32.mrf.mxu1 }
 0x486   : > { %v803_v1 = vadd.f32 %v2922_v61, %v796_v63 }
 0x487   : > { %v793_v2 = vpop.f32.mrf.mxu1 }
 0x488   : > { %v804_v3 = vsel %vm749_vm2, %v803_v1, -inf }
 0x489   : > { %805 = vmax.xlane.f32.xlu1 %v804_v3  ;;  %v2467_v4 = vpop.f32.mrf.mxu1 }
 0x48b   : > { %v909_v5 = vpop.f32.mrf.mxu1 }
 0x48c   : > { %v915_v6 = vmul.f32 0.35355338, %v909_v5 }
 0x48d   : > { %v2478_v7 = vpop.f32.mrf.mxu1 }
 0x48e   : > { %v916_v8 = vadd.f32 %v2922_v61, %v915_v6 }
 0x48f   : > { %v912_v9 = vpop.f32.mrf.mxu1 }
 0x490   : > { %v917_v10 = vsel %vm749_vm2, %v916_v8, -inf }
 0x491   : > { %918 = vmax.xlane.f32.xlu0 %v917_v10  ;;  %v2479_v11 = vpop.f32.mrf.mxu1 }
 0x493   : > { %v1021_v12 = vpop.f32.mrf.mxu1 }
 0x494   : > { %v1027_v13 = vmul.f32 0.35355338, %v1021_v12 }
 0x495   : > { %v2490_v14 = vpop.f32.mrf.mxu1 }
 0x496   : > { %v1028_v15 = vadd.f32 %v2922_v61, %v1027_v13 }
 0x497   : > { %v1024_v16 = vpop.f32.mrf.mxu1 }
 0x498   : > { %v1029_v17 = vsel %vm749_vm2, %v1028_v15, -inf }
 0x499   : > { %1030 = vmax.xlane.f32.xlu0 %v1029_v17  ;;  %v2491_v18 = vpop.f32.mrf.mxu1  ;;  %v1220_v17 = vld [vmem:[%s3269_s9 + $0x10] sm:$0xff] }
 0x49a   : > { %v1221_v18 = vld [vmem:[%s3269_s9 + $0x18] sm:$0xff] }
 0x49b   : > { %v1133_v19 = vpop.f32.mrf.mxu1 }
 0x49c   : > { %v1139_v20 = vmul.f32 0.35355338, %v1133_v19  ;;  %v1225_v19 = vpack.c.bf16 %v1221_v18, %v1220_v17  ;;  %v2338_v17 = vld [vmem:[%s3274_s14] ss:$0 sm:$0xff] }
 0x49d   : > { %v2502_v21 = vpop.f32.mrf.mxu1 }
 0x49e   : > { %v1140_v22 = vadd.f32 %v2922_v61, %v1139_v20  ;;  %2511 = vmatpush3.bf16.msra.mxu1 %v1225_v19  ;;  %v1218_v20 = vld [vmem:[%s3269_s9] sm:$0xff]  ;;  %v1219_v21 = vld [vmem:[%s3269_s9 + $0x8] sm:$0xff] }
 0x49f   : > { %v1136_v23 = vpop.f32.mrf.mxu1  ;;  %2512 = vmatprep.subr.bf16.mxu1 %v2702_v31 }
 0x4a0   : > { %v1141_v24 = vsel %vm749_vm2, %v1140_v22, -inf }
 0x4a1   : > { %1142 = vmax.xlane.f32.xlu0 %v1141_v24  ;;  %v2503_v25 = vpop.f32.mrf.mxu1 }
 0x512   : > { %v806_v26 = vpop.xlane.xlu1 %805 }
 0x513   : > { %v807_v27 = vsub.f32 %v803_v1, %v806_v26 }
 0x515   : > { %v808_v28 = vmul.f32 1.442695, %v807_v27 }
 0x517   : > { %2650 = vpow2.f32 %v808_v28 }
 0x51a   : > { %v919_v29 = vpop.xlane.xlu0 %918 }
 0x51b   : > { %v920_v30 = vsub.f32 %v916_v8, %v919_v29 }
 0x51d   : > { %v921_v32 = vmul.f32 1.442695, %v920_v30 }
 0x51f   : > { %2652 = vpow2.f32 %v921_v32 }
 0x522   : > { %v1031_v35 = vpop.xlane.xlu0 %1030 }
 0x523   : > { %v1032_v44 = vsub.f32 %v1028_v15, %v1031_v35 }
 0x524   : > { %v2651_v33 = vpop.eup %2650 }
 0x525   : > { %v810_v34 = vsel %vm749_vm2, %v2651_v33, 0.0  ;;  %v1033_v45 = vmul.f32 1.442695, %v1032_v44 }
 0x526   : > { %811 = vadd.xlane.f32.xlu1 %v810_v34 }
 0x52a   : > { %v1143_v36 = vpop.xlane.xlu0 %1142 }
 0x52b   : > { %v1144_v37 = vsub.f32 %v1140_v22, %v1143_v36  ;;  %v1224_v22 = vpack.c.bf16 %v1219_v21, %v1218_v20 }
 0x52c   : > { %v2653_v38 = vpop.eup %2652 }
 0x52d   : > { %v1145_v39 = vmul.f32 1.442695, %v1144_v37  ;;  %v923_v40 = vsel %vm749_vm2, %v2653_v38, 0.0  ;;  %2513 = vmatpush3.bf16.msra.mxu1 %v1224_v22 }
 0x52e   : > { %924 = vadd.xlane.f32.xlu0 %v923_v40  ;;  %2526 = vmatprep.subr.bf16.mxu1 %v2702_v31 }
 0x52f   : > { %2654 = vpow2.f32 %v1145_v39  ;;  %v2334_v39 = vld [vmem:[%s3270_s10] ss:$0 sm:$0xff] }
 0x530   : > { %2656 = vpow2.f32 %v1033_v45 }
 0x537   : > { %816 = vrot.lane.b32.xlu1 %v2881_v47, %s3283_s21 }
 0x53c   : > { %v2655_v42 = vpop.eup %2654 }
 0x53d   : > { %v1147_v43 = vsel %vm749_vm2, %v2655_v42, 0.0  ;;  %v2657_v46 = vpop.eup %2656 }
 0x53e   : > { %1148 = vadd.xlane.f32.xlu0 %v1147_v43  ;;  %v1035_v48 = vsel %vm749_vm2, %v2657_v46, 0.0 }
 0x554   : > { %929 = vrot.lane.b32.xlu0 %v2881_v47, %s3282_s1  ;;  %s3287_s1 = smov 24  }
 0x55b   : > { %1036 = vadd.xlane.f32.xlu1 %v1035_v48 }
 0x56c   : > { %1041 = vrot.lane.b32.xlu1 %v2881_v47, %s3281_s26 }
 0x570   : > { %1153 = vrot.lane.b32.xlu1 %v2881_v47, %s3280_s27  ;;  %s3288_s27 = smov 16  }
 0x5af   : > { %v812_v49 = vpop.xlane.xlu1 %811 }
 0x5b0   : > { %2658 = vrcp.f32 %v812_v49 }
 0x5b3   : > { %v817_v50 = vpop.permute.xlu1 %816 }
 0x5b4   : > { %v823_v51 = vsel %vm821_vm3, %v817_v50, 0 }
 0x5b5   : > { %2469 = vmatpush3.bf16.msra.mxu0 %v823_v51 }
 0x5b6   : > { %2480 = vmatprep.subr.bf16.mxu0 %v2702_v31 }
 0x5b7   : > { %v925_v52 = vpop.xlane.xlu0 %924 }
 0x5b8   : > { %2660 = vrcp.f32 %v925_v52 }
 0x5bd   : > { %v2659_v53 = vpop.eup %2658 }
 0x5be   : > { %v814_v54 = vmul.f32 %v2659_v53, %v2651_v33 }
 0x5c0   : > { %v815_v55 = vpack.c.bf16 %v814_v54, %v814_v54  ;;  %v1307_v54 = vld [vmem:[%s3273_s13 + $0x10] sm:$0xff] }
 0x5c2   : > { %2471 = vmatmul.mubr.msk.bf16.vlgmr.msra.gmra.mxu0 %vm749_vm2, %v815_v55 }
 0x5c3   : > { %2482 = vmatprep.mubr.msk.bf16.mxu0 %vm2703_vm1, %v2702_v31 }
 0x5c5   : > { %v2661_v47 = vpop.eup %2660 }
 0x5c6   : > { %v927_v57 = vmul.f32 %v2661_v47, %v2653_v38  ;;  %v1305_v47 = vld [vmem:[%s3273_s13] sm:$0xff] }
 0x5c7   : > { %v1149_v56 = vpop.xlane.xlu0 %1148 }
 0x5c8   : > { %v928_v60 = vpack.c.bf16 %v927_v57, %v927_v57 }
 0x5cb   : > { %v930_v58 = vpop.permute.xlu0 %929 }
 0x5cc   : > { %v935_v59 = vsel %vm821_vm3, %v930_v58, 0 }
 0x5cd   : > { %2481 = vmatpush3.bf16.msra.mxu0 %v935_v59 }
 0x5ce   : > { %2492 = vmatprep.subr.bf16.mxu0 %v2702_v31 }
 0x5d0   : > { %2483 = vmatmul.mubr.msk.bf16.vlgmr.msra.gmra.mxu0 %vm749_vm2, %v928_v60 }
 0x5d1   : > { %2494 = vmatprep.mubr.msk.bf16.mxu0 %vm2703_vm1, %v2702_v31 }
 0x5e4   : > { %v1037_v62 = vpop.xlane.xlu1 %1036 }
 0x5e5   : > { %2662 = vrcp.f32 %v1037_v62 }
 0x5e6   : > { %2664 = vrcp.f32 %v1149_v56  ;;  %v1306_v56 = vld [vmem:[%s3273_s13 + $0x8] sm:$0xff] }
 0x5e7   : > { %v1311_v57 = vpack.c.bf16 %v1306_v56, %v1305_v47 }
 0x5e8   : > { %v1042_v63 = vpop.permute.xlu1 %1041 }
 0x5e9   : > { %v1047_v0 = vsel %vm821_vm3, %v1042_v63, 0  ;;  %v2336_v63 = vld [vmem:[%s3271_s11] ss:$0 sm:$0xff] }
 0x5ea   : > { %2493 = vmatpush3.bf16.msra.mxu0 %v1047_v0 }
 0x5eb   : > { %2504 = vmatprep.subr.bf16.mxu0 %v2702_v31 }
 0x5ec   : > { %v1154_v3 = vpop.permute.xlu1 %1153 }
 0x5ed   : > { %v1159_v6 = vsel %vm821_vm3, %v1154_v3, 0 }
 0x5f2   : > { %v2663_v1 = vpop.eup %2662 }
 0x5f3   : > { %v1039_v2 = vmul.f32 %v2663_v1, %v2657_v46  ;;  %v2665_v5 = vpop.eup %2664  ;;  %v2337_v1 = vld [vmem:[%s3272_s12] ss:$0 sm:$0xff] }
 0x5f4   : > { %v1151_v7 = vmul.f32 %v2665_v5, %v2655_v42  ;;  %v1377_v5 = vld [vmem:[%s3275_s15 + $0x30] sm:$0xff] }
 0x5f5   : > { %v1040_v4 = vpack.c.bf16 %v1039_v2, %v1039_v2 }
 0x5f6   : > { %v1152_v8 = vpack.c.bf16 %v1151_v7, %v1151_v7  ;;  %v1375_v7 = vld [vmem:[%s3275_s15 + $0x20] sm:$0xff] }
 0x5f7   : > { %2495 = vmatmul.mubr.msk.bf16.vlgmr.msra.gmra.mxu0 %vm749_vm2, %v1040_v4 }
 0x5f8   : > { %2505 = vmatpush3.bf16.msra.mxu0 %v1159_v6  ;;  %2506 = vmatprep.mubr.msk.bf16.mxu0 %vm2703_vm1, %v2702_v31  ;;  %v1378_v6 = vld [vmem:[%s3275_s15 + $0x38] sm:$0xff] }
 0x5f9   : > { %2518 = vmatprep.subr.bf16.mxu0 %v2702_v31 }
 0x5ff   : > { %2507 = vmatmul.mubr.msk.bf16.vlgmr.msra.gmra.mxu0 %vm749_vm2, %v1152_v8  ;;  %v1384_v8 = vpack.c.bf16 %v1378_v6, %v1377_v5 }
 0x600   : > { %2522 = vmatprep.mubr.msk.bf16.mxu0 %vm2703_vm1, %v2702_v31 }
 0x682   : > { %v859_v9 = vpop.f32.mrf.mxu0 }
 0x684   : > { %v2472_v10 = vpop.f32.mrf.mxu0 }
 0x686   : > { %v862_v11 = vpop.f32.mrf.mxu0 }
 0x687   : > { %v1373_v11 = vld [vmem:[%s3275_s15 + $0x10] sm:$0xff] }
 0x688   : > { %v2473_v12 = vpop.f32.mrf.mxu0 }
 0x689   : > { %v1374_v12 = vld [vmem:[%s3275_s15 + $0x18] sm:$0xff] }
 0x690   : > { %v971_v13 = vpop.f32.mrf.mxu0 }
 0x691   : > { %1202 = vrot.lane.b32.xlu1 %v971_v13, %s3285_s28  ;;  %v1382_v13 = vpack.c.bf16 %v1374_v12, %v1373_v11 }
 0x692   : > { %v2484_v14 = vpop.f32.mrf.mxu0 }
 0x693   : > { %v1371_v14 = vld [vmem:[%s3275_s15] sm:$0xff] }
 0x694   : > { %v974_v15 = vpop.f32.mrf.mxu0 }
 0x695   : > { %v1372_v15 = vld [vmem:[%s3275_s15 + $0x8] sm:$0xff] }
 0x696   : > { %v2485_v16 = vpop.f32.mrf.mxu0 }
 0x697   : > { %v1381_v16 = vpack.c.bf16 %v1372_v15, %v1371_v14 }
 0x6b7   : > { %v1083_v23 = vpop.f32.mrf.mxu0 }
 0x6b8   : > { %1206 = vrot.lane.b32.xlu0 %v1083_v23, %s3288_s27  ;;  %s3299_s27 = smov 104  }
 0x6b9   : > { %v2496_v24 = vpop.f32.mrf.mxu0 }
 0x6bb   : > { %v1086_v25 = vpop.f32.mrf.mxu0 }
 0x6bd   : > { %v2497_v26 = vpop.f32.mrf.mxu0 }
 0x6bf   : > { %v1195_v27 = vpop.f32.mrf.mxu0 }
 0x6c0   : > { %1210 = vrot.lane.b32.xlu1 %v1195_v27, %s3287_s1  ;;  %s3300_s1 = smov 72  }
 0x6c1   : > { %v2508_v28 = vpop.f32.mrf.mxu0 }
 0x6c3   : > { %v1198_v29 = vpop.f32.mrf.mxu0 }
 0x6c5   : > { %v2509_v30 = vpop.f32.mrf.mxu0 }
 0x703   : > { %v1203_v32 = vpop.permute.xlu1 %1202 }
 0x704   : > { %v1213_v34 = vsel %vm749_vm2, %v859_v9, %v1203_v32  ;;  %v1376_v9 = vld [vmem:[%s3275_s15 + $0x28] sm:$0xff] }
 0x705   : > { %v1383_v10 = vpack.c.bf16 %v1376_v9, %v1375_v7 }
 0x72a   : > { %v1207_v33 = vpop.permute.xlu0 %1206 }
 0x72b   : > { %v1215_v35 = vsel %vm1214_vm4, %v1213_v34, %v1207_v33  ;;  %v2340_v34 = vld [vmem:[%s3276_s16] ss:$0 sm:$0xff] }
 0x732   : > { %v1211_v36 = vpop.permute.xlu1 %1210 }
 0x733   : > { %v1217_v37 = vsel %vm1216_vm5, %v1215_v35, %v1211_v36 }
 0x734   : > { %v1223_v38 = vpack.c.bf16 %v1217_v37, %v1217_v37 }
 0x736   : > { %2515 = vmatmul.mubr.msk.bf16.vlgmr.msra.gmra.mxu1 %vm631_vm0, %v1223_v38 }
 0x737   : > { %2534 = vmatprep.mubr.msk.bf16.mxu1 %vm2703_vm1, %v2702_v31  ;;  %2527 = vmatpush3.bf16.msra.mxu1 %v1384_v8 }
 0x738   : > { %2528 = vmatprep.subr.bf16.mxu1 %v2702_v31 }
 0x73b   : > { %2529 = vmatpush3.bf16.msra.mxu1 %v1383_v10 }
 0x73c   : > { %2530 = vmatprep.subr.bf16.mxu1 %v2702_v31 }
 0x73f   : > { %2531 = vmatpush3.bf16.msra.mxu1 %v1382_v13 }
 0x740   : > { %2532 = vmatprep.subr.bf16.mxu1 %v2702_v31 }
 0x743   : > { %2533 = vmatpush3.bf16.msra.mxu1 %v1381_v16 }
 0x744   : > { %2552 = vmatprep.subr.bf16.mxu1 %v2702_v31 }
 0x7f6   : > { %v1269_v40 = vpop.f32.mrf.mxu1 }
 0x7f7   : > { %v1270_v42 = vadd.f32 %v2334_v39, %v1269_v40 }
 0x7f8   : > { %v2516_v43 = vpop.f32.mrf.mxu1 }
 0x7f9   : > { %v1275_v44 = vadd.f32 %v1270_v42, %v2871_v41  ;;  %v1308_v41 = vld [vmem:[%s3273_s13 + $0x18] sm:$0xff] }
 0x7fa   : > { %v1272_v45 = vpop.f32.mrf.mxu1  ;;  %v1312_v55 = vpack.c.bf16 %v1308_v41, %v1307_v54 }
 0x7fb   : > { %v1278_v46 = vsel %vm631_vm0, %v1275_v44, 0.0 }
 0x7fc   : > { %1279 = vadd.xlane.f32.xlu0 %v1278_v46  ;;  %v2517_v48 = vpop.f32.mrf.mxu1  ;;  %2519 = vmatpush3.bf16.msra.mxu0 %v1312_v55 }
 0x7fd   : > { %2520 = vmatprep.subr.bf16.mxu0 %v2702_v31 }
 0x800   : > { %2521 = vmatpush3.bf16.msra.mxu0 %v1311_v57  ;;  %v2342_v57 = vld [vmem:[%s3277_s17] ss:$0 sm:$0xff] }
 0x801   : > { %2538 = vmatprep.subr.bf16.mxu0 %v2702_v31 }
 0x885   : > { %v1280_v49 = vpop.xlane.xlu0 %1279 }
 0x886   : > { %v1281_v50 = vmul.f32 0.03125, %v1280_v49  ;;  %v2346_v49 = vld [vmem:[%s3267_s7 + $0x30] sm:$0xff] }
 0x888   : > { %v1282_v51 = vsub.f32 %v1275_v44, %v1281_v50  ;;  %v2347_v50 = vld [vmem:[%s3267_s7 + $0x38] sm:$0xff] }
 0x88a   : > { %v1283_v52 = vmul.f32 %v1282_v51, %v1282_v51 }
 0x88c   : > { %v1284_v53 = vsel %vm631_vm0, %v1283_v52, 0.0  ;;  %v2344_v52 = vld [vmem:[%s3267_s7 + $0x20] sm:$0xff] }
 0x88d   : > { %1285 = vadd.xlane.f32.xlu1 %v1284_v53  ;;  %v2345_v53 = vld [vmem:[%s3267_s7 + $0x28] sm:$0xff] }
 0x88e   : > { %v1473_v54 = vpack.c.bf16 %v2345_v53, %v2344_v52 }
 0x916   : > { %v1286_v58 = vpop.xlane.xlu1 %1285 }
 0x917   : > { %v1287_v59 = vmul.f32 0.03125, %v1286_v58 }
 0x919   : > { %v1288_v60 = vadd.f32 1e-05, %v1287_v59  ;;  %v2343_v59 = vld [vmem:[%s3278_s18] ss:$0 sm:$0xff] }
 0x91b   : > { %2666 = vrsqrt.f32 %v1288_v60 }
 0x928   : > { %v2667_v62 = vpop.eup %2666 }
 0x929   : > { %v1290_v0 = vmul.f32 %v2667_v62, %v1282_v51  ;;  %v1474_v51 = vpack.c.bf16 %v2347_v50, %v2346_v49 }
 0x92b   : > { %v1297_v2 = vmul.f32 %v2336_v63, %v1290_v0  ;;  %v2349_v0 = vld [vmem:[%s3268_s8 + $0x1] ss:$0 sm:$0xff] }
 0x92d   : > { %v1304_v3 = vadd.f32 %v2337_v1, %v1297_v2 }
 0x92f   : > { %v1310_v4 = vpack.c.bf16 %v1304_v3, %v1304_v3 }
 0x931   : > { %2523 = vmatmul.mubr.msk.bf16.vlgmr.msra.gmra.mxu0 %vm631_vm0, %v1310_v4 }
 0x932   : > { %2542 = vmatprep.mubr.msk.bf16.mxu0 %vm2703_vm1, %v2702_v31  ;;  %2539 = vmatpush3.bf16.msra.mxu0 %v1474_v51 }
 0x933   : > { %2540 = vmatprep.subr.bf16.mxu0 %v2702_v31 }
 0x936   : > { %2541 = vmatpush3.bf16.msra.mxu0 %v1473_v54 }
 0x937   : > { %2546 = vmatprep.subr.bf16.mxu0 %v2702_v31 }
 0x9f1   : > { %v1356_v18 = vpop.f32.mrf.mxu0 }
 0x9f2   : > { %v1357_v19 = vadd.f32 %v2338_v17, %v1356_v18 }
 0x9f3   : > { %v2524_v20 = vpop.f32.mrf.mxu0 }
 0x9f4   : > { %v1363_v21 = vmul.f32 0.044715, %v1357_v19  ;;  %v1362_v29 = vmul.f32 0.5, %v1357_v19 }
 0x9f5   : > { %v1359_v22 = vpop.f32.mrf.mxu0 }
 0x9f6   : > { %v1364_v23 = vmul.f32 %v1363_v21, %v1357_v19 }
 0x9f7   : > { %v2525_v24 = vpop.f32.mrf.mxu0 }
 0x9f8   : > { %v1365_v25 = vmul.f32 %v1364_v23, %v1357_v19 }
 0x9fa   : > { %v1366_v26 = vadd.f32 %v1365_v25, %v1357_v19 }
 0x9fc   : > { %v1367_v27 = vmul.f32 0.7978846, %v1366_v26 }
 0x9fe   : > { %2668 = vtanh.f32 %v1367_v27 }
 0xa0b   : > { %v2669_v28 = vpop.eup %2668 }
 0xa0c   : > { %v1369_v30 = vadd.f32 1.0, %v2669_v28 }
 0xa0e   : > { %v1370_v32 = vmul.f32 %v1369_v30, %v1362_v29 }
 0xa10   : > { %v1380_v33 = vpack.c.bf16 %v1370_v32, %v1370_v32 }
 0xa12   : > { %2535 = vmatmul.mubr.msk.bf16.vlgmr.msra.gmra.mxu1 %vm1391_vm6, %v1380_v33 }
 0xa13   : > { %2554 = vmatprep.mubr.msk.bf16.mxu1 %vm2703_vm1, %v2702_v31 }
 0xad2   : > { %v1429_v35 = vpop.f32.mrf.mxu1 }
 0xad3   : > { %v1430_v36 = vadd.f32 %v2340_v34, %v1429_v35 }
 0xad4   : > { %v2536_v37 = vpop.f32.mrf.mxu1 }
 0xad5   : > { %v1435_v38 = vadd.f32 %v1430_v36, %v1304_v3 }
 0xad6   : > { %v1432_v39 = vpop.f32.mrf.mxu1 }
 0xad7   : > { %v1438_v40 = vsel %vm631_vm0, %v1435_v38, 0.0 }
 0xad8   : > { %1439 = vadd.xlane.f32.xlu0 %v1438_v40  ;;  %v2537_v42 = vpop.f32.mrf.mxu1 }
 0xb61   : > { %v1440_v43 = vpop.xlane.xlu0 %1439 }
 0xb62   : > { %v1441_v44 = vmul.f32 0.03125, %v1440_v43 }
 0xb64   : > { %v1442_v45 = vsub.f32 %v1435_v38, %v1441_v44 }
 0xb66   : > { %v1443_v46 = vmul.f32 %v1442_v45, %v1442_v45 }
 0xb68   : > { %v1444_v48 = vsel %vm631_vm0, %v1443_v46, 0.0 }
 0xb69   : > { %1445 = vadd.xlane.f32.xlu0 %v1444_v48 }
 0xbf2   : > { %v1446_v41 = vpop.xlane.xlu0 %1445 }
 0xbf3   : > { %v1447_v55 = vmul.f32 0.03125, %v1446_v41 }
 0xbf5   : > { %v1448_v47 = vadd.f32 1e-05, %v1447_v55 }
 0xbf7   : > { %2670 = vrsqrt.f32 %v1448_v47 }
 0xc04   : > { %v2671_v56 = vpop.eup %2670 }
 0xc05   : > { %v1450_v58 = vmul.f32 %v2671_v56, %v1442_v45 }
 0xc07   : > { %v1457_v60 = vmul.f32 %v2342_v57, %v1450_v58 }
 0xc09   : > { %v3075_v62 = vadd.f32 %v2343_v59, %v1457_v60 }
 0xc0b   : > { %v1472_v63 = vpack.c.bf16 %v3075_v62, %v3075_v62 }
 0xc0d   : > { %2543 = vmatmul.mubr.msk.bf16.vlgmr.msra.gmra.mxu0 %vm631_vm0, %v1472_v63 }
 0xc0e   : > { %2548 = vmatprep.mubr.msk.bf16.mxu0 %vm2703_vm1, %v2702_v31 }
 0xccd   : > { %v1518_v1 = vpop.f32.mrf.mxu0 }
 0xcce   : > { %v1519_v2 = vadd.f32 %v2349_v0, %v1518_v1 }
 0xccf   : > { %v2544_v3 = vpop.f32.mrf.mxu0 }
 0xcd0   : > { %v3085_v4 = vpack.c.bf16 %v1519_v2, %v1519_v2 }
 0xcd1   : > { %v1521_v5 = vpop.f32.mrf.mxu0 }
 0xcd2   : > { %1638 = vrot.lane.b32.xlu1 %v3085_v4, %s2704_s22  ;;  %1526 = vrot.lane.b32.xlu0 %v3085_v4, %s2705_s2  ;;  %s3301_s22 = smov 64   ;;  %s3302_s2 = smov 56  }
 0xcd3   : > { %v2545_v6 = vpop.f32.mrf.mxu0 }
 0xcd6   : > { %1636 = vrot.lane.b32.xlu1 %v3085_v4, %s2706_s23  ;;  %1748 = vrot.lane.b32.xlu0 %v3085_v4, %s2707_s20  ;;  %s3303_s23 = smov 48   ;;  %s3304_s20 = smov 40  }
 0xcda   : > { %1750 = vrot.lane.b32.xlu1 %v3085_v4, %s3298_s24  ;;  %1860 = vrot.lane.b32.xlu0 %v3085_v4, %s3299_s27 }
 0xcde   : > { %1862 = vrot.lane.b32.xlu1 %v3085_v4, %s3300_s1 }
 0xd44   : > { %v1527_v7 = vpop.permute.xlu0 %1526  ;;  %v1639_v9 = vpop.permute.xlu1 %1638 }
 0xd45   : > { %v1532_v8 = vsel %vm749_vm2, %v1527_v7, 0  ;;  %v1644_v11 = vsel %vm749_vm2, %v1639_v9, 0 }
 0xd46   : > { %2547 = vmatpush3.bf16.xpose.msra.mxu0 %v1532_v8 }
 0xd47   : > { %2558 = vmatprep.subr.bf16.mxu0 %v2702_v31 }
 0xd48   : > { %v1637_v10 = vpop.permute.xlu1 %1636  ;;  %v1749_v15 = vpop.permute.xlu0 %1748 }
 0xd4c   : > { %v1751_v12 = vpop.permute.xlu1 %1750  ;;  %v1861_v17 = vpop.permute.xlu0 %1860 }
 0xd4d   : > { %2549 = vmatmul.mubr.msk.bf16.vlgmr.msra.gmra.mxu0 %vm749_vm2, %v3085_v4  ;;  %v1756_v13 = vsel %vm749_vm2, %v1751_v12, 0 }
 0xd4e   : > { %2559 = vmatpush3.bf16.xpose.msra.mxu0 %v1644_v11  ;;  %2560 = vmatprep.mubr.msk.bf16.mxu0 %vm2703_vm1, %v2702_v31 }
 0xd4f   : > { %2570 = vmatprep.subr.bf16.mxu0 %v2702_v31 }
 0xd50   : > { %v1863_v14 = vpop.permute.xlu1 %1862 }
 0xd51   : > { %v1868_v16 = vsel %vm749_vm2, %v1863_v14, 0 }
 0xd55   : > { %2561 = vmatmul.mubr.msk.bf16.vlgmr.msra.gmra.mxu0 %vm749_vm2, %v1637_v10 }
 0xd56   : > { %2571 = vmatpush3.bf16.xpose.msra.mxu0 %v1756_v13  ;;  %2572 = vmatprep.mubr.msk.bf16.mxu0 %vm2703_vm1, %v2702_v31 }
 0xd57   : > { %2582 = vmatprep.subr.bf16.mxu0 %v2702_v31 }
 0xd5d   : > { %2573 = vmatmul.mubr.msk.bf16.vlgmr.msra.gmra.mxu0 %vm749_vm2, %v1749_v15 }
 0xd5e   : > { %2583 = vmatpush3.bf16.xpose.msra.mxu0 %v1868_v16  ;;  %2584 = vmatprep.mubr.msk.bf16.mxu0 %vm2703_vm1, %v2702_v31 }
 0xd5f   : > { %2594 = vmatprep.subr.bf16.mxu0 %v2702_v31 }
 0xd65   : > { %2585 = vmatmul.mubr.msk.bf16.vlgmr.msra.gmra.mxu0 %vm749_vm2, %v1861_v17 }
 0xd66   : > { %2598 = vmatprep.mubr.msk.bf16.mxu0 %vm2703_vm1, %v2702_v31 }
 0xe0d   : > { %v1568_v18 = vpop.f32.mrf.mxu0 }
 0xe0e   : > { %v1574_v19 = vmul.f32 0.35355338, %v1568_v18 }
 0xe0f   : > { %v2550_v20 = vpop.f32.mrf.mxu0 }
 0xe10   : > { %v1575_v21 = vadd.f32 %v2922_v61, %v1574_v19 }
 0xe11   : > { %v1571_v22 = vpop.f32.mrf.mxu0 }
 0xe12   : > { %v1576_v23 = vsel %vm749_vm2, %v1575_v21, -inf }
 0xe13   : > { %1577 = vmax.xlane.f32.xlu1 %v1576_v23  ;;  %v2551_v24 = vpop.f32.mrf.mxu0 }
 0xe15   : > { %v1680_v25 = vpop.f32.mrf.mxu0 }
 0xe16   : > { %v1686_v26 = vmul.f32 0.35355338, %v1680_v25 }
 0xe17   : > { %v2562_v27 = vpop.f32.mrf.mxu0 }
 0xe18   : > { %v1687_v28 = vadd.f32 %v2922_v61, %v1686_v26 }
 0xe19   : > { %v1683_v29 = vpop.f32.mrf.mxu0 }
 0xe1a   : > { %v1688_v30 = vsel %vm749_vm2, %v1687_v28, -inf }
 0xe1b   : > { %1689 = vmax.xlane.f32.xlu0 %v1688_v30  ;;  %v2563_v32 = vpop.f32.mrf.mxu0 }
 0xe1d   : > { %v1792_v33 = vpop.f32.mrf.mxu0 }
 0xe1e   : > { %v1798_v34 = vmul.f32 0.35355338, %v1792_v33 }
 0xe1f   : > { %v2574_v35 = vpop.f32.mrf.mxu0 }
 0xe20   : > { %v1799_v36 = vadd.f32 %v2922_v61, %v1798_v34 }
 0xe21   : > { %v1795_v37 = vpop.f32.mrf.mxu0 }
 0xe22   : > { %v1800_v38 = vsel %vm749_vm2, %v1799_v36, -inf  ;;  %v2361_v37 = vld [vmem:[%s3269_s9 + $0x30] sm:$0xff] }
 0xe23   : > { %1801 = vmax.xlane.f32.xlu0 %v1800_v38  ;;  %v2575_v39 = vpop.f32.mrf.mxu0  ;;  %v2362_v38 = vld [vmem:[%s3269_s9 + $0x38] sm:$0xff] }
 0xe24   : > { %v1996_v39 = vpack.c.bf16 %v2362_v38, %v2361_v37 }
 0xe25   : > { %v1904_v40 = vpop.f32.mrf.mxu0 }
 0xe26   : > { %v1910_v42 = vmul.f32 0.35355338, %v1904_v40  ;;  %2595 = vmatpush3.bf16.msra.mxu0 %v1996_v39  ;;  %v2359_v40 = vld [vmem:[%s3269_s9 + $0x20] sm:$0xff] }
 0xe27   : > { %v2586_v43 = vpop.f32.mrf.mxu0  ;;  %2596 = vmatprep.subr.bf16.mxu0 %v2702_v31 }
 0xe28   : > { %v1911_v44 = vadd.f32 %v2922_v61, %v1910_v42  ;;  %v2360_v42 = vld [vmem:[%s3269_s9 + $0x28] sm:$0xff] }
 0xe29   : > { %v1907_v45 = vpop.f32.mrf.mxu0  ;;  %v1995_v43 = vpack.c.bf16 %v2360_v42, %v2359_v40 }
 0xe2a   : > { %v1912_v46 = vsel %vm749_vm2, %v1911_v44, -inf }
 0xe2b   : > { %1913 = vmax.xlane.f32.xlu0 %v1912_v46  ;;  %v2587_v48 = vpop.f32.mrf.mxu0  ;;  %2597 = vmatpush3.bf16.msra.mxu0 %v1995_v43 }
 0xe2c   : > { %2610 = vmatprep.subr.bf16.mxu0 %v2702_v31 }
 0xe9c   : > { %v1578_v49 = vpop.xlane.xlu1 %1577 }
 0xe9d   : > { %v1579_v50 = vsub.f32 %v1575_v21, %v1578_v49 }
 0xe9f   : > { %v1580_v51 = vmul.f32 1.442695, %v1579_v50 }
 0xea1   : > { %2672 = vpow2.f32 %v1580_v51 }
 0xea4   : > { %v1690_v52 = vpop.xlane.xlu0 %1689 }
 0xea5   : > { %v1691_v53 = vsub.f32 %v1687_v28, %v1690_v52 }
 0xea7   : > { %v1692_v54 = vmul.f32 1.442695, %v1691_v53 }
 0xea9   : > { %2674 = vpow2.f32 %v1692_v54 }
 0xeac   : > { %v1802_v47 = vpop.xlane.xlu0 %1801 }
 0xead   : > { %v1803_v0 = vsub.f32 %v1799_v36, %v1802_v47 }
 0xeae   : > { %v2673_v41 = vpop.eup %2672 }
 0xeaf   : > { %v1582_v55 = vsel %vm749_vm2, %v2673_v41, 0.0  ;;  %v1804_v1 = vmul.f32 1.442695, %v1803_v0 }
 0xeb0   : > { %1583 = vadd.xlane.f32.xlu1 %v1582_v55 }
 0xeb4   : > { %v1914_v56 = vpop.xlane.xlu0 %1913 }
 0xeb5   : > { %v1915_v61 = vsub.f32 %v1911_v44, %v1914_v56 }
 0xeb6   : > { %v2675_v57 = vpop.eup %2674 }
 0xeb7   : > { %v1916_v58 = vmul.f32 1.442695, %v1915_v61  ;;  %v1694_v59 = vsel %vm749_vm2, %v2675_v57, 0.0 }
 0xeb8   : > { %1695 = vadd.xlane.f32.xlu0 %v1694_v59 }
 0xeb9   : > { %2676 = vpow2.f32 %v1916_v58 }
 0xeba   : > { %2678 = vpow2.f32 %v1804_v1 }
 0xec1   : > { %1588 = vrot.lane.b32.xlu1 %v3085_v4, %s3301_s22  ;;  %s3306_s22 = smov 16  }
 0xec6   : > { %v2677_v60 = vpop.eup %2676 }
 0xec7   : > { %v1918_v63 = vsel %vm749_vm2, %v2677_v60, 0.0  ;;  %v2679_v2 = vpop.eup %2678 }
 0xec8   : > { %1919 = vadd.xlane.f32.xlu0 %v1918_v63  ;;  %v1806_v3 = vsel %vm749_vm2, %v2679_v2, 0.0 }
 0xede   : > { %1700 = vrot.lane.b32.xlu0 %v3085_v4, %s3302_s2  ;;  %s3307_s2 = smov 24  }
 0xee5   : > { %1807 = vadd.xlane.f32.xlu1 %v1806_v3 }
 0xef6   : > { %1812 = vrot.lane.b32.xlu1 %v3085_v4, %s3303_s23 }
 0xefa   : > { %1924 = vrot.lane.b32.xlu1 %v3085_v4, %s3304_s20  ;;  %s626_s20 = scalar_lea.vmem %s3279_s19, %s3309_s30 }
 0xf39   : > { %v1584_v5 = vpop.xlane.xlu1 %1583 }
 0xf3a   : > { %2680 = vrcp.f32 %v1584_v5 }
 0xf3d   : > { %v1589_v6 = vpop.permute.xlu1 %1588 }
 0xf3e   : > { %v1594_v7 = vsel %vm821_vm3, %v1589_v6, 0 }
 0xf3f   : > { %2553 = vmatpush3.bf16.msra.mxu1 %v1594_v7 }
 0xf40   : > { %2564 = vmatprep.subr.bf16.mxu1 %v2702_v31 }
 0xf41   : > { %v1696_v8 = vpop.xlane.xlu0 %1695 }
 0xf42   : > { %2682 = vrcp.f32 %v1696_v8 }
 0xf47   : > { %v2681_v9 = vpop.eup %2680 }
 0xf48   : > { %v1586_v10 = vmul.f32 %v2681_v9, %v2673_v41  ;;  %v2372_v9 = vld [vmem:[%s3273_s13 + $0x30] sm:$0xff] }
 0xf4a   : > { %v1587_v11 = vpack.c.bf16 %v1586_v10, %v1586_v10 }
 0xf4c   : > { %2555 = vmatmul.mubr.msk.bf16.vlgmr.msra.gmra.mxu1 %vm749_vm2, %v1587_v11  ;;  %v2370_v11 = vld [vmem:[%s3273_s13 + $0x20] sm:$0xff] }
 0xf4d   : > { %2566 = vmatprep.mubr.msk.bf16.mxu1 %vm2703_vm1, %v2702_v31 }
 0xf4f   : > { %v2683_v12 = vpop.eup %2682 }
 0xf50   : > { %v1698_v13 = vmul.f32 %v2683_v12, %v2675_v57  ;;  %v2364_v57 = vld [vmem:[%s3270_s10 + $0x1] ss:$0 sm:$0xff]  ;;  %v2371_v12 = vld [vmem:[%s3273_s13 + $0x28] sm:$0xff] }
 0xf51   : > { %v1920_v4 = vpop.xlane.xlu0 %1919 }
 0xf52   : > { %v1699_v16 = vpack.c.bf16 %v1698_v13, %v1698_v13 }
 0xf55   : > { %v1701_v14 = vpop.permute.xlu0 %1700 }
 0xf56   : > { %v1706_v15 = vsel %vm821_vm3, %v1701_v14, 0 }
 0xf57   : > { %2565 = vmatpush3.bf16.msra.mxu1 %v1706_v15 }
 0xf58   : > { %2576 = vmatprep.subr.bf16.mxu1 %v2702_v31 }
 0xf5a   : > { %2567 = vmatmul.mubr.msk.bf16.vlgmr.msra.gmra.mxu1 %vm749_vm2, %v1699_v16 }
 0xf5b   : > { %2578 = vmatprep.mubr.msk.bf16.mxu1 %vm2703_vm1, %v2702_v31 }
 0xf6e   : > { %v1808_v17 = vpop.xlane.xlu1 %1807 }
 0xf6f   : > { %2684 = vrcp.f32 %v1808_v17  ;;  %v2368_v17 = vld [vmem:[%s3271_s11 + $0x1] ss:$0 sm:$0xff] }
 0xf70   : > { %2686 = vrcp.f32 %v1920_v4  ;;  %v2086_v4 = vpack.c.bf16 %v2371_v12, %v2370_v11 }
 0xf72   : > { %v1813_v18 = vpop.permute.xlu1 %1812 }
 0xf73   : > { %v1818_v19 = vsel %vm821_vm3, %v1813_v18, 0 }
 0xf74   : > { %2577 = vmatpush3.bf16.msra.mxu1 %v1818_v19  ;;  %v2369_v19 = vld [vmem:[%s3272_s12 + $0x1] ss:$0 sm:$0xff] }
 0xf75   : > { %2588 = vmatprep.subr.bf16.mxu1 %v2702_v31 }
 0xf76   : > { %v1925_v22 = vpop.permute.xlu1 %1924 }
 0xf77   : > { %v1930_v25 = vsel %vm821_vm3, %v1925_v22, 0 }
 0xf7c   : > { %v2685_v20 = vpop.eup %2684 }
 0xf7d   : > { %v1810_v21 = vmul.f32 %v2685_v20, %v2679_v2  ;;  %v2687_v24 = vpop.eup %2686 }
 0xf7e   : > { %v1922_v26 = vmul.f32 %v2687_v24, %v2677_v60  ;;  %v2384_v24 = vld [vmem:[%s3275_s15 + $0x78] sm:$0xff] }
 0xf7f   : > { %v1811_v23 = vpack.c.bf16 %v1810_v21, %v1810_v21 }
 0xf80   : > { %v1923_v27 = vpack.c.bf16 %v1922_v26, %v1922_v26 }
 0xf81   : > { %2579 = vmatmul.mubr.msk.bf16.vlgmr.msra.gmra.mxu1 %vm749_vm2, %v1811_v23  ;;  %v2383_v23 = vld [vmem:[%s3275_s15 + $0x70] sm:$0xff] }
 0xf82   : > { %2589 = vmatpush3.bf16.msra.mxu1 %v1930_v25  ;;  %2590 = vmatprep.mubr.msk.bf16.mxu1 %vm2703_vm1, %v2702_v31  ;;  %v2381_v25 = vld [vmem:[%s3275_s15 + $0x60] sm:$0xff]  ;;  %v2161_v26 = vpack.c.bf16 %v2384_v24, %v2383_v23 }
 0xf83   : > { %2602 = vmatprep.subr.bf16.mxu1 %v2702_v31 }
 0xf89   : > { %2591 = vmatmul.mubr.msk.bf16.vlgmr.msra.gmra.mxu1 %vm749_vm2, %v1923_v27  ;;  %v2382_v27 = vld [vmem:[%s3275_s15 + $0x68] sm:$0xff] }
 0xf8a   : > { %2606 = vmatprep.mubr.msk.bf16.mxu1 %vm2703_vm1, %v2702_v31 }
0x100c   : > { %v1630_v28 = vpop.f32.mrf.mxu1 }
0x100e   : > { %v2556_v29 = vpop.f32.mrf.mxu1 }
0x100f   : > { %v2379_v29 = vld [vmem:[%s3275_s15 + $0x50] sm:$0xff] }
0x1010   : > { %v1633_v30 = vpop.f32.mrf.mxu1 }
0x1011   : > { %v2380_v30 = vld [vmem:[%s3275_s15 + $0x58] sm:$0xff] }
0x1012   : > { %v2557_v32 = vpop.f32.mrf.mxu1 }
0x1013   : > { %v2159_v32 = vpack.c.bf16 %v2380_v30, %v2379_v29 }
0x101a   : > { %v1742_v33 = vpop.f32.mrf.mxu1 }
0x101b   : > { %1973 = vrot.lane.b32.xlu1 %v1742_v33, %s3305_s29  ;;  %v2377_v33 = vld [vmem:[%s3275_s15 + $0x40] sm:$0xff] }
0x101c   : > { %v2568_v34 = vpop.f32.mrf.mxu1 }
0x101d   : > { %v2378_v34 = vld [vmem:[%s3275_s15 + $0x48] sm:$0xff] }
0x101e   : > { %v1745_v35 = vpop.f32.mrf.mxu1 }
0x101f   : > { %v2158_v35 = vpack.c.bf16 %v2378_v34, %v2377_v33 }
0x1020   : > { %v2569_v36 = vpop.f32.mrf.mxu1 }
0x1021   : > { %v2375_v36 = vld [vmem:[%s3274_s14 + $0x1] ss:$0 sm:$0xff] }
0x1041   : > { %v1854_v44 = vpop.f32.mrf.mxu1 }
0x1042   : > { %1977 = vrot.lane.b32.xlu0 %v1854_v44, %s3306_s22 }
0x1043   : > { %v2580_v45 = vpop.f32.mrf.mxu1 }
0x1045   : > { %v1857_v46 = vpop.f32.mrf.mxu1 }
0x1047   : > { %v2581_v48 = vpop.f32.mrf.mxu1 }
0x1049   : > { %v1966_v49 = vpop.f32.mrf.mxu1 }
0x104a   : > { %1981 = vrot.lane.b32.xlu1 %v1966_v49, %s3307_s2 }
0x104b   : > { %v2592_v50 = vpop.f32.mrf.mxu1 }
0x104d   : > { %v1969_v51 = vpop.f32.mrf.mxu1 }
0x104f   : > { %v2593_v52 = vpop.f32.mrf.mxu1 }
0x108d   : > { %v1974_v53 = vpop.permute.xlu1 %1973 }
0x108e   : > { %v1984_v41 = vsel %vm749_vm2, %v1630_v28, %v1974_v53  ;;  %v2160_v28 = vpack.c.bf16 %v2382_v27, %v2381_v25  ;;  %v2386_v53 = vld [vmem:[%s3276_s16 + $0x1] ss:$0 sm:$0xff] }
0x10b4   : > { %v1978_v54 = vpop.permute.xlu0 %1977 }
0x10b5   : > { %v1985_v55 = vsel %vm1214_vm4, %v1984_v41, %v1978_v54 }
0x10bc   : > { %v1982_v47 = vpop.permute.xlu1 %1981 }
0x10bd   : > { %v1986_v56 = vsel %vm1216_vm5, %v1985_v55, %v1982_v47 }
0x10be   : > { %v1994_v61 = vpack.c.bf16 %v1986_v56, %v1986_v56 }
0x10c0   : > { %2599 = vmatmul.mubr.msk.bf16.vlgmr.msra.gmra.mxu0 %vm631_vm0, %v1994_v61 }
0x10c1   : > { %2618 = vmatprep.mubr.msk.bf16.mxu0 %vm2703_vm1, %v2702_v31  ;;  %2611 = vmatpush3.bf16.msra.mxu0 %v2161_v26 }
0x10c2   : > { %2612 = vmatprep.subr.bf16.mxu0 %v2702_v31 }
0x10c5   : > { %2613 = vmatpush3.bf16.msra.mxu0 %v2160_v28 }
0x10c6   : > { %2614 = vmatprep.subr.bf16.mxu0 %v2702_v31 }
0x10c9   : > { %2615 = vmatpush3.bf16.msra.mxu0 %v2159_v32 }
0x10ca   : > { %2616 = vmatprep.subr.bf16.mxu0 %v2702_v31 }
0x10cd   : > { %2617 = vmatpush3.bf16.msra.mxu0 %v2158_v35 }
0x1180   : > { %v2040_v58 = vpop.f32.mrf.mxu0 }
0x1181   : > { %v2041_v59 = vadd.f32 %v2364_v57, %v2040_v58 }
0x1182   : > { %v2600_v60 = vpop.f32.mrf.mxu0 }
0x1183   : > { %v2046_v63 = vadd.f32 %v2041_v59, %v3075_v62  ;;  %v2373_v62 = vld [vmem:[%s3273_s13 + $0x38] sm:$0xff] }
0x1184   : > { %v2043_v0 = vpop.f32.mrf.mxu0  ;;  %v2087_v10 = vpack.c.bf16 %v2373_v62, %v2372_v9 }
0x1185   : > { %v2051_v1 = vsel %vm631_vm0, %v2046_v63, 0.0 }
0x1186   : > { %2052 = vadd.xlane.f32.xlu0 %v2051_v1  ;;  %v2601_v2 = vpop.f32.mrf.mxu0  ;;  %2603 = vmatpush3.bf16.msra.mxu1 %v2087_v10 }
0x1187   : > { %2604 = vmatprep.subr.bf16.mxu1 %v2702_v31 }
0x118a   : > { %2605 = vmatpush3.bf16.msra.mxu1 %v2086_v4 }
0x120f   : > { %v2053_v3 = vpop.xlane.xlu0 %2052 }
0x1210   : > { %v2054_v5 = vmul.f32 0.03125, %v2053_v3 }
0x1212   : > { %v2055_v6 = vsub.f32 %v2046_v63, %v2054_v5 }
0x1214   : > { %v2056_v7 = vmul.f32 %v2055_v6, %v2055_v6 }
0x1216   : > { %v2057_v8 = vsel %vm631_vm0, %v2056_v7, 0.0 }
0x1217   : > { %2058 = vadd.xlane.f32.xlu1 %v2057_v8  ;;  %v2391_v8 = vld [vmem:[%s3278_s18 + $0x1] ss:$0 sm:$0xff] }
0x12a0   : > { %v2059_v13 = vpop.xlane.xlu1 %2058 }
0x12a1   : > { %v2060_v14 = vmul.f32 0.03125, %v2059_v13 }
0x12a3   : > { %v2061_v15 = vadd.f32 1e-05, %v2060_v14 }
0x12a5   : > { %2688 = vrsqrt.f32 %v2061_v15 }
0x12b2   : > { %v2689_v16 = vpop.eup %2688 }
0x12b3   : > { %v2063_v18 = vmul.f32 %v2689_v16, %v2055_v6  ;;  %v2390_v6 = vld [vmem:[%s3277_s17 + $0x1] ss:$0 sm:$0xff] }
0x12b5   : > { %v2070_v20 = vmul.f32 %v2368_v17, %v2063_v18 }
0x12b7   : > { %v2077_v21 = vadd.f32 %v2369_v19, %v2070_v20 }
0x12b9   : > { %v2085_v22 = vpack.c.bf16 %v2077_v21, %v2077_v21 }
0x12bb   : > { %2607 = vmatmul.mubr.msk.bf16.vlgmr.msra.gmra.mxu1 %vm631_vm0, %v2085_v22 }
0x137b   : > { %v2131_v37 = vpop.f32.mrf.mxu1 }
0x137c   : > { %v2132_v38 = vadd.f32 %v2375_v36, %v2131_v37 }
0x137d   : > { %v2608_v39 = vpop.f32.mrf.mxu1 }
0x137e   : > { %v2138_v40 = vmul.f32 0.044715, %v2132_v38  ;;  %v2137_v50 = vmul.f32 0.5, %v2132_v38 }
0x137f   : > { %v2134_v42 = vpop.f32.mrf.mxu1 }
0x1380   : > { %v2139_v43 = vmul.f32 %v2138_v40, %v2132_v38 }
0x1381   : > { %v2609_v44 = vpop.f32.mrf.mxu1 }
0x1382   : > { %v2140_v45 = vmul.f32 %v2139_v43, %v2132_v38 }
0x1384   : > { %v2141_v46 = vadd.f32 %v2140_v45, %v2132_v38 }
0x1386   : > { %v2142_v48 = vmul.f32 0.7978846, %v2141_v46 }
0x1388   : > { %2690 = vtanh.f32 %v2142_v48 }
0x1395   : > { %v2691_v49 = vpop.eup %2690 }
0x1396   : > { %v2144_v51 = vadd.f32 1.0, %v2691_v49 }
0x1398   : > { %v2145_v31 = vmul.f32 %v2144_v51, %v2137_v50 }
0x139a   : > { %v2157_v52 = vpack.c.bf16 %v2145_v31, %v2145_v31 }
0x139c   : > { %2619 = vmatmul.mubr.msk.bf16.vlgmr.msra.gmra.mxu0 %vm1391_vm6, %v2157_v52 }
0x145c   : > { %v2205_v54 = vpop.f32.mrf.mxu0 }
0x145d   : > { %v2206_v41 = vadd.f32 %v2386_v53, %v2205_v54 }
0x145e   : > { %v2620_v55 = vpop.f32.mrf.mxu0 }
0x145f   : > { %v2211_v47 = vadd.f32 %v2206_v41, %v2077_v21 }
0x1460   : > { %v2208_v56 = vpop.f32.mrf.mxu0 }
0x1461   : > { %v2216_v61 = vsel %vm631_vm0, %v2211_v47, 0.0 }
0x1462   : > { %2217 = vadd.xlane.f32.xlu0 %v2216_v61  ;;  %v2621_v57 = vpop.f32.mrf.mxu0 }
0x14eb   : > { %v2218_v58 = vpop.xlane.xlu0 %2217 }
0x14ec   : > { %v2219_v59 = vmul.f32 0.03125, %v2218_v58 }
0x14ee   : > { %v2220_v60 = vsub.f32 %v2211_v47, %v2219_v59 }
0x14f0   : > { %v2221_v63 = vmul.f32 %v2220_v60, %v2220_v60 }
0x14f2   : > { %v2222_v0 = vsel %vm631_vm0, %v2221_v63, 0.0 }
0x14f3   : > { %2223 = vadd.xlane.f32.xlu0 %v2222_v0 }
0x157c   : > { %v2224_v1 = vpop.xlane.xlu0 %2223 }
0x157d   : > { %v2225_v2 = vmul.f32 0.03125, %v2224_v1 }
0x157f   : > { %v2226_v3 = vadd.f32 1e-05, %v2225_v2 }
0x1581   : > { %2692 = vrsqrt.f32 %v2226_v3 }
0x158e   : > { %v2693_v5 = vpop.eup %2692 }
0x158f   : > { %v2228_v7 = vmul.f32 %v2693_v5, %v2220_v60 }
0x1591   : > { %v2235_v9 = vmul.f32 %v2390_v6, %v2228_v7 }
0x1593   : > { %v2242_v62 = vadd.f32 %v2391_v8, %v2235_v9 }
0x1595   : > { %2244 = vst.msk [vmem:[%s626_s20] sm:$0x1] %vm2243_vm7, %v2242_v62 }
0x1596 PF: > { %s29_s0 = sadd.s32 1, %s2700_s0  }
0x1597   : > { %p26_p4 = scmp.ge.s32.totalorder %s29_s0, 6  }
0x1599   :  { %28 = sbr.rel (!%p26_p4) target bundleno = 5 (0x5), region = 144 }

</bundles_post_ra>
